<compile_context>
chip_gen: v7x
topology: tpu7x:2x2x1
jax: 0.10.0
libtpu: 0.0.40
codegen_flags: <defaults>
</compile_context>

<pallas_src>
import jax
import jax.numpy as jnp
from jax.experimental import pallas as pl
from jax.experimental.pallas import tpu as pltpu
import numpy as np


def _lstm_ed_kernel(ts_ref,                          # (T, TB, F) time-major input
                    wih_e_ref, whh_e_ref, b_e_ref,   # encoder: (F,4H),(H,4H),(1,4H)
                    w_dec_ref, b_dec_ref,            # fused decoder: (H,4H),(1,4H)
                    wout_ref, bout_ref,              # output head: (H,F),(1,F)
                    out_ref):                        # (T, TB, F) time-major output
    T, TB, F = ts_ref.shape
    H = whh_e_ref.shape[0]

    whh_e = whh_e_ref[...]
    w_dec = w_dec_ref[...]
    wout = wout_ref[...]

    # Hoisted bias broadcasts (JAX does not CSE broadcast_in_dim inside the
    # unrolled loops below).
    b_dec = jnp.broadcast_to(b_dec_ref[...], (TB, 4 * H))
    bout = jnp.broadcast_to(bout_ref[...], (TB, F))

    # ---- encoder input pre-projection: one batched MXU matmul + bias ----
    x_flat = ts_ref[...].reshape(T * TB, F)          # layout-preserving reshape
    x_proj = (jnp.dot(x_flat, wih_e_ref[...], preferred_element_type=jnp.float32)
              + b_e_ref[...])                        # (T*TB, 4H), bias folded once

    def lstm_update(gates, c):
        # PyTorch gate order: i, f, g, o.  Two full-vreg EUP calls, then slice.
        sig = jax.nn.sigmoid(gates)
        tnh = jnp.tanh(gates)
        i_g = sig[:, 0 * H:1 * H]
        f_g = sig[:, 1 * H:2 * H]
        g_g = tnh[:, 2 * H:3 * H]
        o_g = sig[:, 3 * H:4 * H]
        c_n = f_g * c + i_g * g_g
        h_n = o_g * jnp.tanh(c_n)
        return h_n, c_n

    h = jnp.zeros((TB, H), jnp.float32)
    c = jnp.zeros((TB, H), jnp.float32)

    # ---- encoder: fully unrolled, one matmul per step on the critical path ----
    for t in range(T):
        gates = x_proj[t * TB:(t + 1) * TB, :] + jnp.dot(
            h, whh_e, preferred_element_type=jnp.float32)
        h, c = lstm_update(gates, c)

    # ---- decoder: reversed in time, output head fused into the recurrence ----
    for k in range(T):
        i = T - 1 - k
        # y feeds only the output store; the recurrence does not depend on it.
        y = jnp.dot(h, wout, preferred_element_type=jnp.float32) + bout
        out_ref[i] = y.astype(out_ref.dtype)         # static-index, off-path store
        if k < T - 1:                                # final hidden update is unused
            gates = jnp.dot(h, w_dec, preferred_element_type=jnp.float32) + b_dec
            h, c = lstm_update(gates, c)


def lstm_ed_forward(ts_batch, params, *, batch_tile=8):
    """ts_batch: (B, T, F) float. Returns the reconstruction (B, T, F) float32."""
    B, T, F = ts_batch.shape
    H = params["whh_e"].shape[0]

    # Fold the output head into the decoder recurrence (once, outside the kernel).
    w_dec_fused = params["whh_d"] + params["wout"] @ params["wih_d"]
    b_dec_fused = params["b_d"] + params["bout"] @ params["wih_d"]

    # Pad batch to a multiple of the tile (sublane fill + megacore batch grid)
    # and go time-major so per-step kernel accesses are whole contiguous tiles.
    b_pad = ((B + batch_tile - 1) // batch_tile) * batch_tile
    x = ts_batch.astype(jnp.float32)
    if b_pad != B:
        x = jnp.pad(x, ((0, b_pad - B), (0, 0), (0, 0)))
    x_tm = jnp.transpose(x, (1, 0, 2))               # (T, B_pad, F)

    out_tm = pl.pallas_call(
        _lstm_ed_kernel,
        out_shape=jax.ShapeDtypeStruct((T, b_pad, F), jnp.float32),
        grid=(b_pad // batch_tile,),
        in_specs=[
            pl.BlockSpec((T, batch_tile, F), lambda b: (0, b, 0)),   # ts (time-major)
            pl.BlockSpec((F, 4 * H), lambda b: (0, 0)),              # wih_e
            pl.BlockSpec((H, 4 * H), lambda b: (0, 0)),              # whh_e
            pl.BlockSpec((1, 4 * H), lambda b: (0, 0)),              # b_e
            pl.BlockSpec((H, 4 * H), lambda b: (0, 0)),              # w_dec_fused
            pl.BlockSpec((1, 4 * H), lambda b: (0, 0)),              # b_dec_fused
            pl.BlockSpec((H, F), lambda b: (0, 0)),                  # wout
            pl.BlockSpec((1, F), lambda b: (0, 0)),                  # bout
        ],
        out_specs=pl.BlockSpec((T, batch_tile, F), lambda b: (0, b, 0)),
        compiler_params=pltpu.CompilerParams(
            dimension_semantics=("parallel",)),
    )(x_tm,
      params["wih_e"], params["whh_e"], params["b_e"],
      w_dec_fused, b_dec_fused,
      params["wout"], params["bout"])

    return jnp.transpose(out_tm, (1, 0, 2))[:B]      # back to (B, T, F), strip pad


def init_params(key, n_features, hidden_size):
    """Deterministic init mimicking PyTorch's U(-1/sqrt(H), 1/sqrt(H))."""
    H, F = hidden_size, n_features
    bound = 1.0 / np.sqrt(H)
    ks = jax.random.split(key, 10)

    def u(k, shape):
        return jax.random.uniform(k, shape, jnp.float32, -bound, bound)

    # Stored pre-transposed for the kernel; biases pre-summed (b_ih + b_hh).
    return {
        "wih_e": u(ks[0], (F, 4 * H)),
        "whh_e": u(ks[1], (H, 4 * H)),
        "b_e":   u(ks[2], (1, 4 * H)) + u(ks[3], (1, 4 * H)),
        "wih_d": u(ks[4], (F, 4 * H)),
        "whh_d": u(ks[5], (H, 4 * H)),
        "b_d":   u(ks[6], (1, 4 * H)) + u(ks[7], (1, 4 * H)),
        "wout":  u(ks[8], (H, F)),
        "bout":  u(ks[9], (1, F)),
    }


def lstm_ed_reference(ts_batch, params):
    """Pure-JAX, non-fused reference of the same forward pass, for validation."""
    B, T, F = ts_batch.shape
    H = params["whh_e"].shape[0]

    def cell(x, h, c, wih, whh, b):
        g = x @ wih + h @ whh + b
        i = jax.nn.sigmoid(g[:, 0 * H:1 * H])
        f = jax.nn.sigmoid(g[:, 1 * H:2 * H])
        gg = jnp.tanh(g[:, 2 * H:3 * H])
        o = jax.nn.sigmoid(g[:, 3 * H:4 * H])
        c = f * c + i * gg
        return o * jnp.tanh(c), c

    h = jnp.zeros((B, H), jnp.float32)
    c = jnp.zeros((B, H), jnp.float32)
    for t in range(T):
        h, c = cell(ts_batch[:, t, :], h, c,
                    params["wih_e"], params["whh_e"], params["b_e"])

    out = jnp.zeros((B, T, F), jnp.float32)
    for i in reversed(range(T)):
        y = h @ params["wout"] + params["bout"]
        out = out.at[:, i, :].set(y)
        h, c = cell(y, h, c, params["wih_d"], params["whh_d"], params["b_d"])
    return out


if __name__ == "__main__":
    # Shapes consistent with the module's forward:
    # batch=4, seq_len=8, n_features=8, hidden_size=32, n_layers=(1,1), eval mode.
    B, T, F, H = 4, 8, 8, 32

    key = jax.random.PRNGKey(0)
    k_x, k_p = jax.random.split(key)
    ts_batch = jax.random.normal(k_x, (B, T, F), jnp.float32)
    params = init_params(k_p, n_features=F, hidden_size=H)

    fwd = jax.jit(lstm_ed_forward)
    out = jax.block_until_ready(fwd(ts_batch, params))
    ref = jax.block_until_ready(lstm_ed_reference(ts_batch, params))

    assert out.shape == (B, T, F)
    assert np.allclose(np.asarray(out), np.asarray(ref), atol=1e-4, rtol=1e-4)
    print("KERNEL_OK")
</pallas_src>

<mosaic_0001>
module attributes {stable_mosaic.version = 11 : i64} {
  func.func @_lstm_ed_kernel(%arg0: i32, %arg1: memref<8x8x8xf32, #tpu.memory_space<vmem>>, %arg2: memref<8x128xf32, #tpu.memory_space<vmem>>, %arg3: memref<32x128xf32, #tpu.memory_space<vmem>>, %arg4: memref<1x128xf32, #tpu.memory_space<vmem>>, %arg5: memref<32x128xf32, #tpu.memory_space<vmem>>, %arg6: memref<1x128xf32, #tpu.memory_space<vmem>>, %arg7: memref<32x8xf32, #tpu.memory_space<vmem>>, %arg8: memref<1x8xf32, #tpu.memory_space<vmem>>, %arg9: memref<8x8x8xf32, #tpu.memory_space<vmem>>) attributes {dimension_semantics = [#tpu.dimension_semantics<parallel>], iteration_bounds = array<i64: 1>, scalar_prefetch = 0 : i64, scratch_operands = 0 : i64, tpu.core_type = #tpu.core_type<tc>, window_params = [{transform_indices = @transform_0, window_bounds = array<i64: 8, 8, 8>}, {pipeline_mode = #tpu.pipeline_mode<synchronous>, transform_indices = @transform_1, window_bounds = array<i64: 8, 128>}, {pipeline_mode = #tpu.pipeline_mode<synchronous>, transform_indices = @transform_2, window_bounds = array<i64: 32, 128>}, {pipeline_mode = #tpu.pipeline_mode<synchronous>, transform_indices = @transform_3, window_bounds = array<i64: 1, 128>}, {pipeline_mode = #tpu.pipeline_mode<synchronous>, transform_indices = @transform_4, window_bounds = array<i64: 32, 128>}, {pipeline_mode = #tpu.pipeline_mode<synchronous>, transform_indices = @transform_5, window_bounds = array<i64: 1, 128>}, {pipeline_mode = #tpu.pipeline_mode<synchronous>, transform_indices = @transform_6, window_bounds = array<i64: 32, 8>}, {pipeline_mode = #tpu.pipeline_mode<synchronous>, transform_indices = @transform_7, window_bounds = array<i64: 1, 8>}, {transform_indices = @transform_8, window_bounds = array<i64: 8, 8, 8>}]} {
    %c0 = arith.constant 0 : index
    %c0_0 = arith.constant 0 : index
    %0 = vector.load %arg3[%c0, %c0_0] : memref<32x128xf32, #tpu.memory_space<vmem>>, vector<32x128xf32>
    %c0_1 = arith.constant 0 : index
    %c0_2 = arith.constant 0 : index
    %1 = vector.load %arg5[%c0_1, %c0_2] : memref<32x128xf32, #tpu.memory_space<vmem>>, vector<32x128xf32>
    %c0_3 = arith.constant 0 : index
    %c0_4 = arith.constant 0 : index
    %2 = vector.load %arg7[%c0_3, %c0_4] : memref<32x8xf32, #tpu.memory_space<vmem>>, vector<32x8xf32>
    %c0_5 = arith.constant 0 : index
    %c0_6 = arith.constant 0 : index
    %3 = vector.load %arg6[%c0_5, %c0_6] : memref<1x128xf32, #tpu.memory_space<vmem>>, vector<1x128xf32>
    %4 = vector.shape_cast %3 : vector<1x128xf32> to vector<1x128xf32>
    %5 = vector.broadcast %4 : vector<1x128xf32> to vector<8x128xf32>
    %c0_7 = arith.constant 0 : index
    %c0_8 = arith.constant 0 : index
    %6 = vector.load %arg8[%c0_7, %c0_8] : memref<1x8xf32, #tpu.memory_space<vmem>>, vector<1x8xf32>
    %7 = vector.shape_cast %6 : vector<1x8xf32> to vector<1x8xf32>
    %8 = vector.broadcast %7 : vector<1x8xf32> to vector<8x8xf32>
    %c0_9 = arith.constant 0 : index
    %c0_10 = arith.constant 0 : index
    %c0_11 = arith.constant 0 : index
    %9 = vector.load %arg1[%c0_9, %c0_10, %c0_11] : memref<8x8x8xf32, #tpu.memory_space<vmem>>, vector<8x8x8xf32>
    %10 = vector.shape_cast %9 : vector<8x8x8xf32> to vector<64x8xf32>
    %c0_12 = arith.constant 0 : index
    %c0_13 = arith.constant 0 : index
    %11 = vector.load %arg2[%c0_12, %c0_13] : memref<8x128xf32, #tpu.memory_space<vmem>>, vector<8x128xf32>
    %cst = arith.constant dense<0.000000e+00> : vector<64x128xf32>
    %12 = tpu.matmul %10, %11, %cst {dimension_numbers = #tpu.dot_dimension_numbers<[1], [0], [0], [1], [0, 0, 1, 1], [], []>} : vector<64x8xf32>, vector<8x128xf32>, vector<64x128xf32> -> vector<64x128xf32>
    %c0_14 = arith.constant 0 : index
    %c0_15 = arith.constant 0 : index
    %13 = vector.load %arg4[%c0_14, %c0_15] : memref<1x128xf32, #tpu.memory_space<vmem>>, vector<1x128xf32>
    %14 = vector.broadcast %13 : vector<1x128xf32> to vector<64x128xf32>
    %15 = arith.addf %12, %14 : vector<64x128xf32>
    %cst_16 = arith.constant 0.000000e+00 : f32
    %16 = vector.broadcast %cst_16 : f32 to vector<8x32xf32>
    %cst_17 = arith.constant 0.000000e+00 : f32
    %17 = vector.broadcast %cst_17 : f32 to vector<8x32xf32>
    %18 = vector.extract_strided_slice %15 {offsets = [0, 0], sizes = [8, 128], strides = [1, 1]} : vector<64x128xf32> to vector<8x128xf32>
    %cst_18 = arith.constant dense<0.000000e+00> : vector<8x128xf32>
    %19 = tpu.matmul %16, %0, %cst_18 {dimension_numbers = #tpu.dot_dimension_numbers<[1], [0], [0], [1], [0, 0, 1, 1], [], []>} : vector<8x32xf32>, vector<32x128xf32>, vector<8x128xf32> -> vector<8x128xf32>
    %20 = arith.addf %18, %19 : vector<8x128xf32>
    %21 = arith.negf %20 : vector<8x128xf32>
    %22 = math.exp %21 : vector<8x128xf32>
    %cst_19 = arith.constant 1.000000e+00 : f32
    %23 = vector.broadcast %cst_19 : f32 to vector<8x128xf32>
    %24 = arith.addf %23, %22 : vector<8x128xf32>
    %25 = arith.divf %23, %24 : vector<8x128xf32>
    %26 = math.tanh %20 : vector<8x128xf32>
    %27 = vector.extract_strided_slice %25 {offsets = [0, 0], sizes = [8, 32], strides = [1, 1]} : vector<8x128xf32> to vector<8x32xf32>
    %28 = vector.extract_strided_slice %25 {offsets = [0, 32], sizes = [8, 32], strides = [1, 1]} : vector<8x128xf32> to vector<8x32xf32>
    %29 = vector.extract_strided_slice %26 {offsets = [0, 64], sizes = [8, 32], strides = [1, 1]} : vector<8x128xf32> to vector<8x32xf32>
    %30 = vector.extract_strided_slice %25 {offsets = [0, 96], sizes = [8, 32], strides = [1, 1]} : vector<8x128xf32> to vector<8x32xf32>
    %31 = arith.mulf %28, %17 : vector<8x32xf32>
    %32 = arith.mulf %27, %29 : vector<8x32xf32>
    %33 = arith.addf %31, %32 : vector<8x32xf32>
    %34 = math.tanh %33 : vector<8x32xf32>
    %35 = arith.mulf %30, %34 : vector<8x32xf32>
    %36 = vector.extract_strided_slice %15 {offsets = [8, 0], sizes = [8, 128], strides = [1, 1]} : vector<64x128xf32> to vector<8x128xf32>
    %cst_20 = arith.constant dense<0.000000e+00> : vector<8x128xf32>
    %37 = tpu.matmul %35, %0, %cst_20 {dimension_numbers = #tpu.dot_dimension_numbers<[1], [0], [0], [1], [0, 0, 1, 1], [], []>} : vector<8x32xf32>, vector<32x128xf32>, vector<8x128xf32> -> vector<8x128xf32>
    %38 = arith.addf %36, %37 : vector<8x128xf32>
    %39 = arith.negf %38 : vector<8x128xf32>
    %40 = math.exp %39 : vector<8x128xf32>
    %cst_21 = arith.constant 1.000000e+00 : f32
    %41 = vector.broadcast %cst_21 : f32 to vector<8x128xf32>
    %42 = arith.addf %41, %40 : vector<8x128xf32>
    %43 = arith.divf %41, %42 : vector<8x128xf32>
    %44 = math.tanh %38 : vector<8x128xf32>
    %45 = vector.extract_strided_slice %43 {offsets = [0, 0], sizes = [8, 32], strides = [1, 1]} : vector<8x128xf32> to vector<8x32xf32>
    %46 = vector.extract_strided_slice %43 {offsets = [0, 32], sizes = [8, 32], strides = [1, 1]} : vector<8x128xf32> to vector<8x32xf32>
    %47 = vector.extract_strided_slice %44 {offsets = [0, 64], sizes = [8, 32], strides = [1, 1]} : vector<8x128xf32> to vector<8x32xf32>
    %48 = vector.extract_strided_slice %43 {offsets = [0, 96], sizes = [8, 32], strides = [1, 1]} : vector<8x128xf32> to vector<8x32xf32>
    %49 = arith.mulf %46, %33 : vector<8x32xf32>
    %50 = arith.mulf %45, %47 : vector<8x32xf32>
    %51 = arith.addf %49, %50 : vector<8x32xf32>
    %52 = math.tanh %51 : vector<8x32xf32>
    %53 = arith.mulf %48, %52 : vector<8x32xf32>
    %54 = vector.extract_strided_slice %15 {offsets = [16, 0], sizes = [8, 128], strides = [1, 1]} : vector<64x128xf32> to vector<8x128xf32>
    %cst_22 = arith.constant dense<0.000000e+00> : vector<8x128xf32>
    %55 = tpu.matmul %53, %0, %cst_22 {dimension_numbers = #tpu.dot_dimension_numbers<[1], [0], [0], [1], [0, 0, 1, 1], [], []>} : vector<8x32xf32>, vector<32x128xf32>, vector<8x128xf32> -> vector<8x128xf32>
    %56 = arith.addf %54, %55 : vector<8x128xf32>
    %57 = arith.negf %56 : vector<8x128xf32>
    %58 = math.exp %57 : vector<8x128xf32>
    %cst_23 = arith.constant 1.000000e+00 : f32
    %59 = vector.broadcast %cst_23 : f32 to vector<8x128xf32>
    %60 = arith.addf %59, %58 : vector<8x128xf32>
    %61 = arith.divf %59, %60 : vector<8x128xf32>
    %62 = math.tanh %56 : vector<8x128xf32>
    %63 = vector.extract_strided_slice %61 {offsets = [0, 0], sizes = [8, 32], strides = [1, 1]} : vector<8x128xf32> to vector<8x32xf32>
    %64 = vector.extract_strided_slice %61 {offsets = [0, 32], sizes = [8, 32], strides = [1, 1]} : vector<8x128xf32> to vector<8x32xf32>
    %65 = vector.extract_strided_slice %62 {offsets = [0, 64], sizes = [8, 32], strides = [1, 1]} : vector<8x128xf32> to vector<8x32xf32>
    %66 = vector.extract_strided_slice %61 {offsets = [0, 96], sizes = [8, 32], strides = [1, 1]} : vector<8x128xf32> to vector<8x32xf32>
    %67 = arith.mulf %64, %51 : vector<8x32xf32>
    %68 = arith.mulf %63, %65 : vector<8x32xf32>
    %69 = arith.addf %67, %68 : vector<8x32xf32>
    %70 = math.tanh %69 : vector<8x32xf32>
    %71 = arith.mulf %66, %70 : vector<8x32xf32>
    %72 = vector.extract_strided_slice %15 {offsets = [24, 0], sizes = [8, 128], strides = [1, 1]} : vector<64x128xf32> to vector<8x128xf32>
    %cst_24 = arith.constant dense<0.000000e+00> : vector<8x128xf32>
    %73 = tpu.matmul %71, %0, %cst_24 {dimension_numbers = #tpu.dot_dimension_numbers<[1], [0], [0], [1], [0, 0, 1, 1], [], []>} : vector<8x32xf32>, vector<32x128xf32>, vector<8x128xf32> -> vector<8x128xf32>
    %74 = arith.addf %72, %73 : vector<8x128xf32>
    %75 = arith.negf %74 : vector<8x128xf32>
    %76 = math.exp %75 : vector<8x128xf32>
    %cst_25 = arith.constant 1.000000e+00 : f32
    %77 = vector.broadcast %cst_25 : f32 to vector<8x128xf32>
    %78 = arith.addf %77, %76 : vector<8x128xf32>
    %79 = arith.divf %77, %78 : vector<8x128xf32>
    %80 = math.tanh %74 : vector<8x128xf32>
    %81 = vector.extract_strided_slice %79 {offsets = [0, 0], sizes = [8, 32], strides = [1, 1]} : vector<8x128xf32> to vector<8x32xf32>
    %82 = vector.extract_strided_slice %79 {offsets = [0, 32], sizes = [8, 32], strides = [1, 1]} : vector<8x128xf32> to vector<8x32xf32>
    %83 = vector.extract_strided_slice %80 {offsets = [0, 64], sizes = [8, 32], strides = [1, 1]} : vector<8x128xf32> to vector<8x32xf32>
    %84 = vector.extract_strided_slice %79 {offsets = [0, 96], sizes = [8, 32], strides = [1, 1]} : vector<8x128xf32> to vector<8x32xf32>
    %85 = arith.mulf %82, %69 : vector<8x32xf32>
    %86 = arith.mulf %81, %83 : vector<8x32xf32>
    %87 = arith.addf %85, %86 : vector<8x32xf32>
    %88 = math.tanh %87 : vector<8x32xf32>
    %89 = arith.mulf %84, %88 : vector<8x32xf32>
    %90 = vector.extract_strided_slice %15 {offsets = [32, 0], sizes = [8, 128], strides = [1, 1]} : vector<64x128xf32> to vector<8x128xf32>
    %cst_26 = arith.constant dense<0.000000e+00> : vector<8x128xf32>
    %91 = tpu.matmul %89, %0, %cst_26 {dimension_numbers = #tpu.dot_dimension_numbers<[1], [0], [0], [1], [0, 0, 1, 1], [], []>} : vector<8x32xf32>, vector<32x128xf32>, vector<8x128xf32> -> vector<8x128xf32>
    %92 = arith.addf %90, %91 : vector<8x128xf32>
    %93 = arith.negf %92 : vector<8x128xf32>
    %94 = math.exp %93 : vector<8x128xf32>
    %cst_27 = arith.constant 1.000000e+00 : f32
    %95 = vector.broadcast %cst_27 : f32 to vector<8x128xf32>
    %96 = arith.addf %95, %94 : vector<8x128xf32>
    %97 = arith.divf %95, %96 : vector<8x128xf32>
    %98 = math.tanh %92 : vector<8x128xf32>
    %99 = vector.extract_strided_slice %97 {offsets = [0, 0], sizes = [8, 32], strides = [1, 1]} : vector<8x128xf32> to vector<8x32xf32>
    %100 = vector.extract_strided_slice %97 {offsets = [0, 32], sizes = [8, 32], strides = [1, 1]} : vector<8x128xf32> to vector<8x32xf32>
    %101 = vector.extract_strided_slice %98 {offsets = [0, 64], sizes = [8, 32], strides = [1, 1]} : vector<8x128xf32> to vector<8x32xf32>
    %102 = vector.extract_strided_slice %97 {offsets = [0, 96], sizes = [8, 32], strides = [1, 1]} : vector<8x128xf32> to vector<8x32xf32>
    %103 = arith.mulf %100, %87 : vector<8x32xf32>
    %104 = arith.mulf %99, %101 : vector<8x32xf32>
    %105 = arith.addf %103, %104 : vector<8x32xf32>
    %106 = math.tanh %105 : vector<8x32xf32>
    %107 = arith.mulf %102, %106 : vector<8x32xf32>
    %108 = vector.extract_strided_slice %15 {offsets = [40, 0], sizes = [8, 128], strides = [1, 1]} : vector<64x128xf32> to vector<8x128xf32>
    %cst_28 = arith.constant dense<0.000000e+00> : vector<8x128xf32>
    %109 = tpu.matmul %107, %0, %cst_28 {dimension_numbers = #tpu.dot_dimension_numbers<[1], [0], [0], [1], [0, 0, 1, 1], [], []>} : vector<8x32xf32>, vector<32x128xf32>, vector<8x128xf32> -> vector<8x128xf32>
    %110 = arith.addf %108, %109 : vector<8x128xf32>
    %111 = arith.negf %110 : vector<8x128xf32>
    %112 = math.exp %111 : vector<8x128xf32>
    %cst_29 = arith.constant 1.000000e+00 : f32
    %113 = vector.broadcast %cst_29 : f32 to vector<8x128xf32>
    %114 = arith.addf %113, %112 : vector<8x128xf32>
    %115 = arith.divf %113, %114 : vector<8x128xf32>
    %116 = math.tanh %110 : vector<8x128xf32>
    %117 = vector.extract_strided_slice %115 {offsets = [0, 0], sizes = [8, 32], strides = [1, 1]} : vector<8x128xf32> to vector<8x32xf32>
    %118 = vector.extract_strided_slice %115 {offsets = [0, 32], sizes = [8, 32], strides = [1, 1]} : vector<8x128xf32> to vector<8x32xf32>
    %119 = vector.extract_strided_slice %116 {offsets = [0, 64], sizes = [8, 32], strides = [1, 1]} : vector<8x128xf32> to vector<8x32xf32>
    %120 = vector.extract_strided_slice %115 {offsets = [0, 96], sizes = [8, 32], strides = [1, 1]} : vector<8x128xf32> to vector<8x32xf32>
    %121 = arith.mulf %118, %105 : vector<8x32xf32>
    %122 = arith.mulf %117, %119 : vector<8x32xf32>
    %123 = arith.addf %121, %122 : vector<8x32xf32>
    %124 = math.tanh %123 : vector<8x32xf32>
    %125 = arith.mulf %120, %124 : vector<8x32xf32>
    %126 = vector.extract_strided_slice %15 {offsets = [48, 0], sizes = [8, 128], strides = [1, 1]} : vector<64x128xf32> to vector<8x128xf32>
    %cst_30 = arith.constant dense<0.000000e+00> : vector<8x128xf32>
    %127 = tpu.matmul %125, %0, %cst_30 {dimension_numbers = #tpu.dot_dimension_numbers<[1], [0], [0], [1], [0, 0, 1, 1], [], []>} : vector<8x32xf32>, vector<32x128xf32>, vector<8x128xf32> -> vector<8x128xf32>
    %128 = arith.addf %126, %127 : vector<8x128xf32>
    %129 = arith.negf %128 : vector<8x128xf32>
    %130 = math.exp %129 : vector<8x128xf32>
    %cst_31 = arith.constant 1.000000e+00 : f32
    %131 = vector.broadcast %cst_31 : f32 to vector<8x128xf32>
    %132 = arith.addf %131, %130 : vector<8x128xf32>
    %133 = arith.divf %131, %132 : vector<8x128xf32>
    %134 = math.tanh %128 : vector<8x128xf32>
    %135 = vector.extract_strided_slice %133 {offsets = [0, 0], sizes = [8, 32], strides = [1, 1]} : vector<8x128xf32> to vector<8x32xf32>
    %136 = vector.extract_strided_slice %133 {offsets = [0, 32], sizes = [8, 32], strides = [1, 1]} : vector<8x128xf32> to vector<8x32xf32>
    %137 = vector.extract_strided_slice %134 {offsets = [0, 64], sizes = [8, 32], strides = [1, 1]} : vector<8x128xf32> to vector<8x32xf32>
    %138 = vector.extract_strided_slice %133 {offsets = [0, 96], sizes = [8, 32], strides = [1, 1]} : vector<8x128xf32> to vector<8x32xf32>
    %139 = arith.mulf %136, %123 : vector<8x32xf32>
    %140 = arith.mulf %135, %137 : vector<8x32xf32>
    %141 = arith.addf %139, %140 : vector<8x32xf32>
    %142 = math.tanh %141 : vector<8x32xf32>
    %143 = arith.mulf %138, %142 : vector<8x32xf32>
    %144 = vector.extract_strided_slice %15 {offsets = [56, 0], sizes = [8, 128], strides = [1, 1]} : vector<64x128xf32> to vector<8x128xf32>
    %cst_32 = arith.constant dense<0.000000e+00> : vector<8x128xf32>
    %145 = tpu.matmul %143, %0, %cst_32 {dimension_numbers = #tpu.dot_dimension_numbers<[1], [0], [0], [1], [0, 0, 1, 1], [], []>} : vector<8x32xf32>, vector<32x128xf32>, vector<8x128xf32> -> vector<8x128xf32>
    %146 = arith.addf %144, %145 : vector<8x128xf32>
    %147 = arith.negf %146 : vector<8x128xf32>
    %148 = math.exp %147 : vector<8x128xf32>
    %cst_33 = arith.constant 1.000000e+00 : f32
    %149 = vector.broadcast %cst_33 : f32 to vector<8x128xf32>
    %150 = arith.addf %149, %148 : vector<8x128xf32>
    %151 = arith.divf %149, %150 : vector<8x128xf32>
    %152 = math.tanh %146 : vector<8x128xf32>
    %153 = vector.extract_strided_slice %151 {offsets = [0, 0], sizes = [8, 32], strides = [1, 1]} : vector<8x128xf32> to vector<8x32xf32>
    %154 = vector.extract_strided_slice %151 {offsets = [0, 32], sizes = [8, 32], strides = [1, 1]} : vector<8x128xf32> to vector<8x32xf32>
    %155 = vector.extract_strided_slice %152 {offsets = [0, 64], sizes = [8, 32], strides = [1, 1]} : vector<8x128xf32> to vector<8x32xf32>
    %156 = vector.extract_strided_slice %151 {offsets = [0, 96], sizes = [8, 32], strides = [1, 1]} : vector<8x128xf32> to vector<8x32xf32>
    %157 = arith.mulf %154, %141 : vector<8x32xf32>
    %158 = arith.mulf %153, %155 : vector<8x32xf32>
    %159 = arith.addf %157, %158 : vector<8x32xf32>
    %160 = math.tanh %159 : vector<8x32xf32>
    %161 = arith.mulf %156, %160 : vector<8x32xf32>
    %cst_34 = arith.constant dense<0.000000e+00> : vector<8x8xf32>
    %162 = tpu.matmul %161, %2, %cst_34 {dimension_numbers = #tpu.dot_dimension_numbers<[1], [0], [0], [1], [0, 0, 1, 1], [], []>} : vector<8x32xf32>, vector<32x8xf32>, vector<8x8xf32> -> vector<8x8xf32>
    %163 = arith.addf %162, %8 : vector<8x8xf32>
    %c7 = arith.constant 7 : index
    %c0_35 = arith.constant 0 : index
    %c0_36 = arith.constant 0 : index
    %164 = vector.load %arg9[%c7, %c0_35, %c0_36] : memref<8x8x8xf32, #tpu.memory_space<vmem>>, vector<1x8x8xf32>
    %165 = vector.shape_cast %164 : vector<1x8x8xf32> to vector<8x8xf32>
    %166 = vector.shape_cast %163 : vector<8x8xf32> to vector<1x8x8xf32>
    tpu.vector_store %arg9[%c7, %c0_35, %c0_36], %166 {strides = array<i32>} : memref<8x8x8xf32, #tpu.memory_space<vmem>>, vector<1x8x8xf32>,
    %cst_37 = arith.constant dense<0.000000e+00> : vector<8x128xf32>
    %167 = tpu.matmul %161, %1, %cst_37 {dimension_numbers = #tpu.dot_dimension_numbers<[1], [0], [0], [1], [0, 0, 1, 1], [], []>} : vector<8x32xf32>, vector<32x128xf32>, vector<8x128xf32> -> vector<8x128xf32>
    %168 = arith.addf %167, %5 : vector<8x128xf32>
    %169 = arith.negf %168 : vector<8x128xf32>
    %170 = math.exp %169 : vector<8x128xf32>
    %cst_38 = arith.constant 1.000000e+00 : f32
    %171 = vector.broadcast %cst_38 : f32 to vector<8x128xf32>
    %172 = arith.addf %171, %170 : vector<8x128xf32>
    %173 = arith.divf %171, %172 : vector<8x128xf32>
    %174 = math.tanh %168 : vector<8x128xf32>
    %175 = vector.extract_strided_slice %173 {offsets = [0, 0], sizes = [8, 32], strides = [1, 1]} : vector<8x128xf32> to vector<8x32xf32>
    %176 = vector.extract_strided_slice %173 {offsets = [0, 32], sizes = [8, 32], strides = [1, 1]} : vector<8x128xf32> to vector<8x32xf32>
    %177 = vector.extract_strided_slice %174 {offsets = [0, 64], sizes = [8, 32], strides = [1, 1]} : vector<8x128xf32> to vector<8x32xf32>
    %178 = vector.extract_strided_slice %173 {offsets = [0, 96], sizes = [8, 32], strides = [1, 1]} : vector<8x128xf32> to vector<8x32xf32>
    %179 = arith.mulf %176, %159 : vector<8x32xf32>
    %180 = arith.mulf %175, %177 : vector<8x32xf32>
    %181 = arith.addf %179, %180 : vector<8x32xf32>
    %182 = math.tanh %181 : vector<8x32xf32>
    %183 = arith.mulf %178, %182 : vector<8x32xf32>
    %cst_39 = arith.constant dense<0.000000e+00> : vector<8x8xf32>
    %184 = tpu.matmul %183, %2, %cst_39 {dimension_numbers = #tpu.dot_dimension_numbers<[1], [0], [0], [1], [0, 0, 1, 1], [], []>} : vector<8x32xf32>, vector<32x8xf32>, vector<8x8xf32> -> vector<8x8xf32>
    %185 = arith.addf %184, %8 : vector<8x8xf32>
    %c6 = arith.constant 6 : index
    %c0_40 = arith.constant 0 : index
    %c0_41 = arith.constant 0 : index
    %186 = vector.load %arg9[%c6, %c0_40, %c0_41] : memref<8x8x8xf32, #tpu.memory_space<vmem>>, vector<1x8x8xf32>
    %187 = vector.shape_cast %186 : vector<1x8x8xf32> to vector<8x8xf32>
    %188 = vector.shape_cast %185 : vector<8x8xf32> to vector<1x8x8xf32>
    tpu.vector_store %arg9[%c6, %c0_40, %c0_41], %188 {strides = array<i32>} : memref<8x8x8xf32, #tpu.memory_space<vmem>>, vector<1x8x8xf32>,
    %cst_42 = arith.constant dense<0.000000e+00> : vector<8x128xf32>
    %189 = tpu.matmul %183, %1, %cst_42 {dimension_numbers = #tpu.dot_dimension_numbers<[1], [0], [0], [1], [0, 0, 1, 1], [], []>} : vector<8x32xf32>, vector<32x128xf32>, vector<8x128xf32> -> vector<8x128xf32>
    %190 = arith.addf %189, %5 : vector<8x128xf32>
    %191 = arith.negf %190 : vector<8x128xf32>
    %192 = math.exp %191 : vector<8x128xf32>
    %cst_43 = arith.constant 1.000000e+00 : f32
    %193 = vector.broadcast %cst_43 : f32 to vector<8x128xf32>
    %194 = arith.addf %193, %192 : vector<8x128xf32>
    %195 = arith.divf %193, %194 : vector<8x128xf32>
    %196 = math.tanh %190 : vector<8x128xf32>
    %197 = vector.extract_strided_slice %195 {offsets = [0, 0], sizes = [8, 32], strides = [1, 1]} : vector<8x128xf32> to vector<8x32xf32>
    %198 = vector.extract_strided_slice %195 {offsets = [0, 32], sizes = [8, 32], strides = [1, 1]} : vector<8x128xf32> to vector<8x32xf32>
    %199 = vector.extract_strided_slice %196 {offsets = [0, 64], sizes = [8, 32], strides = [1, 1]} : vector<8x128xf32> to vector<8x32xf32>
    %200 = vector.extract_strided_slice %195 {offsets = [0, 96], sizes = [8, 32], strides = [1, 1]} : vector<8x128xf32> to vector<8x32xf32>
    %201 = arith.mulf %198, %181 : vector<8x32xf32>
    %202 = arith.mulf %197, %199 : vector<8x32xf32>
    %203 = arith.addf %201, %202 : vector<8x32xf32>
    %204 = math.tanh %203 : vector<8x32xf32>
    %205 = arith.mulf %200, %204 : vector<8x32xf32>
    %cst_44 = arith.constant dense<0.000000e+00> : vector<8x8xf32>
    %206 = tpu.matmul %205, %2, %cst_44 {dimension_numbers = #tpu.dot_dimension_numbers<[1], [0], [0], [1], [0, 0, 1, 1], [], []>} : vector<8x32xf32>, vector<32x8xf32>, vector<8x8xf32> -> vector<8x8xf32>
    %207 = arith.addf %206, %8 : vector<8x8xf32>
    %c5 = arith.constant 5 : index
    %c0_45 = arith.constant 0 : index
    %c0_46 = arith.constant 0 : index
    %208 = vector.load %arg9[%c5, %c0_45, %c0_46] : memref<8x8x8xf32, #tpu.memory_space<vmem>>, vector<1x8x8xf32>
    %209 = vector.shape_cast %208 : vector<1x8x8xf32> to vector<8x8xf32>
    %210 = vector.shape_cast %207 : vector<8x8xf32> to vector<1x8x8xf32>
    tpu.vector_store %arg9[%c5, %c0_45, %c0_46], %210 {strides = array<i32>} : memref<8x8x8xf32, #tpu.memory_space<vmem>>, vector<1x8x8xf32>,
    %cst_47 = arith.constant dense<0.000000e+00> : vector<8x128xf32>
    %211 = tpu.matmul %205, %1, %cst_47 {dimension_numbers = #tpu.dot_dimension_numbers<[1], [0], [0], [1], [0, 0, 1, 1], [], []>} : vector<8x32xf32>, vector<32x128xf32>, vector<8x128xf32> -> vector<8x128xf32>
    %212 = arith.addf %211, %5 : vector<8x128xf32>
    %213 = arith.negf %212 : vector<8x128xf32>
    %214 = math.exp %213 : vector<8x128xf32>
    %cst_48 = arith.constant 1.000000e+00 : f32
    %215 = vector.broadcast %cst_48 : f32 to vector<8x128xf32>
    %216 = arith.addf %215, %214 : vector<8x128xf32>
    %217 = arith.divf %215, %216 : vector<8x128xf32>
    %218 = math.tanh %212 : vector<8x128xf32>
    %219 = vector.extract_strided_slice %217 {offsets = [0, 0], sizes = [8, 32], strides = [1, 1]} : vector<8x128xf32> to vector<8x32xf32>
    %220 = vector.extract_strided_slice %217 {offsets = [0, 32], sizes = [8, 32], strides = [1, 1]} : vector<8x128xf32> to vector<8x32xf32>
    %221 = vector.extract_strided_slice %218 {offsets = [0, 64], sizes = [8, 32], strides = [1, 1]} : vector<8x128xf32> to vector<8x32xf32>
    %222 = vector.extract_strided_slice %217 {offsets = [0, 96], sizes = [8, 32], strides = [1, 1]} : vector<8x128xf32> to vector<8x32xf32>
    %223 = arith.mulf %220, %203 : vector<8x32xf32>
    %224 = arith.mulf %219, %221 : vector<8x32xf32>
    %225 = arith.addf %223, %224 : vector<8x32xf32>
    %226 = math.tanh %225 : vector<8x32xf32>
    %227 = arith.mulf %222, %226 : vector<8x32xf32>
    %cst_49 = arith.constant dense<0.000000e+00> : vector<8x8xf32>
    %228 = tpu.matmul %227, %2, %cst_49 {dimension_numbers = #tpu.dot_dimension_numbers<[1], [0], [0], [1], [0, 0, 1, 1], [], []>} : vector<8x32xf32>, vector<32x8xf32>, vector<8x8xf32> -> vector<8x8xf32>
    %229 = arith.addf %228, %8 : vector<8x8xf32>
    %c4 = arith.constant 4 : index
    %c0_50 = arith.constant 0 : index
    %c0_51 = arith.constant 0 : index
    %230 = vector.load %arg9[%c4, %c0_50, %c0_51] : memref<8x8x8xf32, #tpu.memory_space<vmem>>, vector<1x8x8xf32>
    %231 = vector.shape_cast %230 : vector<1x8x8xf32> to vector<8x8xf32>
    %232 = vector.shape_cast %229 : vector<8x8xf32> to vector<1x8x8xf32>
    tpu.vector_store %arg9[%c4, %c0_50, %c0_51], %232 {strides = array<i32>} : memref<8x8x8xf32, #tpu.memory_space<vmem>>, vector<1x8x8xf32>,
    %cst_52 = arith.constant dense<0.000000e+00> : vector<8x128xf32>
    %233 = tpu.matmul %227, %1, %cst_52 {dimension_numbers = #tpu.dot_dimension_numbers<[1], [0], [0], [1], [0, 0, 1, 1], [], []>} : vector<8x32xf32>, vector<32x128xf32>, vector<8x128xf32> -> vector<8x128xf32>
    %234 = arith.addf %233, %5 : vector<8x128xf32>
    %235 = arith.negf %234 : vector<8x128xf32>
    %236 = math.exp %235 : vector<8x128xf32>
    %cst_53 = arith.constant 1.000000e+00 : f32
    %237 = vector.broadcast %cst_53 : f32 to vector<8x128xf32>
    %238 = arith.addf %237, %236 : vector<8x128xf32>
    %239 = arith.divf %237, %238 : vector<8x128xf32>
    %240 = math.tanh %234 : vector<8x128xf32>
    %241 = vector.extract_strided_slice %239 {offsets = [0, 0], sizes = [8, 32], strides = [1, 1]} : vector<8x128xf32> to vector<8x32xf32>
    %242 = vector.extract_strided_slice %239 {offsets = [0, 32], sizes = [8, 32], strides = [1, 1]} : vector<8x128xf32> to vector<8x32xf32>
    %243 = vector.extract_strided_slice %240 {offsets = [0, 64], sizes = [8, 32], strides = [1, 1]} : vector<8x128xf32> to vector<8x32xf32>
    %244 = vector.extract_strided_slice %239 {offsets = [0, 96], sizes = [8, 32], strides = [1, 1]} : vector<8x128xf32> to vector<8x32xf32>
    %245 = arith.mulf %242, %225 : vector<8x32xf32>
    %246 = arith.mulf %241, %243 : vector<8x32xf32>
    %247 = arith.addf %245, %246 : vector<8x32xf32>
    %248 = math.tanh %247 : vector<8x32xf32>
    %249 = arith.mulf %244, %248 : vector<8x32xf32>
    %cst_54 = arith.constant dense<0.000000e+00> : vector<8x8xf32>
    %250 = tpu.matmul %249, %2, %cst_54 {dimension_numbers = #tpu.dot_dimension_numbers<[1], [0], [0], [1], [0, 0, 1, 1], [], []>} : vector<8x32xf32>, vector<32x8xf32>, vector<8x8xf32> -> vector<8x8xf32>
    %251 = arith.addf %250, %8 : vector<8x8xf32>
    %c3 = arith.constant 3 : index
    %c0_55 = arith.constant 0 : index
    %c0_56 = arith.constant 0 : index
    %252 = vector.load %arg9[%c3, %c0_55, %c0_56] : memref<8x8x8xf32, #tpu.memory_space<vmem>>, vector<1x8x8xf32>
    %253 = vector.shape_cast %252 : vector<1x8x8xf32> to vector<8x8xf32>
    %254 = vector.shape_cast %251 : vector<8x8xf32> to vector<1x8x8xf32>
    tpu.vector_store %arg9[%c3, %c0_55, %c0_56], %254 {strides = array<i32>} : memref<8x8x8xf32, #tpu.memory_space<vmem>>, vector<1x8x8xf32>,
    %cst_57 = arith.constant dense<0.000000e+00> : vector<8x128xf32>
    %255 = tpu.matmul %249, %1, %cst_57 {dimension_numbers = #tpu.dot_dimension_numbers<[1], [0], [0], [1], [0, 0, 1, 1], [], []>} : vector<8x32xf32>, vector<32x128xf32>, vector<8x128xf32> -> vector<8x128xf32>
    %256 = arith.addf %255, %5 : vector<8x128xf32>
    %257 = arith.negf %256 : vector<8x128xf32>
    %258 = math.exp %257 : vector<8x128xf32>
    %cst_58 = arith.constant 1.000000e+00 : f32
    %259 = vector.broadcast %cst_58 : f32 to vector<8x128xf32>
    %260 = arith.addf %259, %258 : vector<8x128xf32>
    %261 = arith.divf %259, %260 : vector<8x128xf32>
    %262 = math.tanh %256 : vector<8x128xf32>
    %263 = vector.extract_strided_slice %261 {offsets = [0, 0], sizes = [8, 32], strides = [1, 1]} : vector<8x128xf32> to vector<8x32xf32>
    %264 = vector.extract_strided_slice %261 {offsets = [0, 32], sizes = [8, 32], strides = [1, 1]} : vector<8x128xf32> to vector<8x32xf32>
    %265 = vector.extract_strided_slice %262 {offsets = [0, 64], sizes = [8, 32], strides = [1, 1]} : vector<8x128xf32> to vector<8x32xf32>
    %266 = vector.extract_strided_slice %261 {offsets = [0, 96], sizes = [8, 32], strides = [1, 1]} : vector<8x128xf32> to vector<8x32xf32>
    %267 = arith.mulf %264, %247 : vector<8x32xf32>
    %268 = arith.mulf %263, %265 : vector<8x32xf32>
    %269 = arith.addf %267, %268 : vector<8x32xf32>
    %270 = math.tanh %269 : vector<8x32xf32>
    %271 = arith.mulf %266, %270 : vector<8x32xf32>
    %cst_59 = arith.constant dense<0.000000e+00> : vector<8x8xf32>
    %272 = tpu.matmul %271, %2, %cst_59 {dimension_numbers = #tpu.dot_dimension_numbers<[1], [0], [0], [1], [0, 0, 1, 1], [], []>} : vector<8x32xf32>, vector<32x8xf32>, vector<8x8xf32> -> vector<8x8xf32>
    %273 = arith.addf %272, %8 : vector<8x8xf32>
    %c2 = arith.constant 2 : index
    %c0_60 = arith.constant 0 : index
    %c0_61 = arith.constant 0 : index
    %274 = vector.load %arg9[%c2, %c0_60, %c0_61] : memref<8x8x8xf32, #tpu.memory_space<vmem>>, vector<1x8x8xf32>
    %275 = vector.shape_cast %274 : vector<1x8x8xf32> to vector<8x8xf32>
    %276 = vector.shape_cast %273 : vector<8x8xf32> to vector<1x8x8xf32>
    tpu.vector_store %arg9[%c2, %c0_60, %c0_61], %276 {strides = array<i32>} : memref<8x8x8xf32, #tpu.memory_space<vmem>>, vector<1x8x8xf32>,
    %cst_62 = arith.constant dense<0.000000e+00> : vector<8x128xf32>
    %277 = tpu.matmul %271, %1, %cst_62 {dimension_numbers = #tpu.dot_dimension_numbers<[1], [0], [0], [1], [0, 0, 1, 1], [], []>} : vector<8x32xf32>, vector<32x128xf32>, vector<8x128xf32> -> vector<8x128xf32>
    %278 = arith.addf %277, %5 : vector<8x128xf32>
    %279 = arith.negf %278 : vector<8x128xf32>
    %280 = math.exp %279 : vector<8x128xf32>
    %cst_63 = arith.constant 1.000000e+00 : f32
    %281 = vector.broadcast %cst_63 : f32 to vector<8x128xf32>
    %282 = arith.addf %281, %280 : vector<8x128xf32>
    %283 = arith.divf %281, %282 : vector<8x128xf32>
    %284 = math.tanh %278 : vector<8x128xf32>
    %285 = vector.extract_strided_slice %283 {offsets = [0, 0], sizes = [8, 32], strides = [1, 1]} : vector<8x128xf32> to vector<8x32xf32>
    %286 = vector.extract_strided_slice %283 {offsets = [0, 32], sizes = [8, 32], strides = [1, 1]} : vector<8x128xf32> to vector<8x32xf32>
    %287 = vector.extract_strided_slice %284 {offsets = [0, 64], sizes = [8, 32], strides = [1, 1]} : vector<8x128xf32> to vector<8x32xf32>
    %288 = vector.extract_strided_slice %283 {offsets = [0, 96], sizes = [8, 32], strides = [1, 1]} : vector<8x128xf32> to vector<8x32xf32>
    %289 = arith.mulf %286, %269 : vector<8x32xf32>
    %290 = arith.mulf %285, %287 : vector<8x32xf32>
    %291 = arith.addf %289, %290 : vector<8x32xf32>
    %292 = math.tanh %291 : vector<8x32xf32>
    %293 = arith.mulf %288, %292 : vector<8x32xf32>
    %cst_64 = arith.constant dense<0.000000e+00> : vector<8x8xf32>
    %294 = tpu.matmul %293, %2, %cst_64 {dimension_numbers = #tpu.dot_dimension_numbers<[1], [0], [0], [1], [0, 0, 1, 1], [], []>} : vector<8x32xf32>, vector<32x8xf32>, vector<8x8xf32> -> vector<8x8xf32>
    %295 = arith.addf %294, %8 : vector<8x8xf32>
    %c1 = arith.constant 1 : index
    %c0_65 = arith.constant 0 : index
    %c0_66 = arith.constant 0 : index
    %296 = vector.load %arg9[%c1, %c0_65, %c0_66] : memref<8x8x8xf32, #tpu.memory_space<vmem>>, vector<1x8x8xf32>
    %297 = vector.shape_cast %296 : vector<1x8x8xf32> to vector<8x8xf32>
    %298 = vector.shape_cast %295 : vector<8x8xf32> to vector<1x8x8xf32>
    tpu.vector_store %arg9[%c1, %c0_65, %c0_66], %298 {strides = array<i32>} : memref<8x8x8xf32, #tpu.memory_space<vmem>>, vector<1x8x8xf32>,
    %cst_67 = arith.constant dense<0.000000e+00> : vector<8x128xf32>
    %299 = tpu.matmul %293, %1, %cst_67 {dimension_numbers = #tpu.dot_dimension_numbers<[1], [0], [0], [1], [0, 0, 1, 1], [], []>} : vector<8x32xf32>, vector<32x128xf32>, vector<8x128xf32> -> vector<8x128xf32>
    %300 = arith.addf %299, %5 : vector<8x128xf32>
    %301 = arith.negf %300 : vector<8x128xf32>
    %302 = math.exp %301 : vector<8x128xf32>
    %cst_68 = arith.constant 1.000000e+00 : f32
    %303 = vector.broadcast %cst_68 : f32 to vector<8x128xf32>
    %304 = arith.addf %303, %302 : vector<8x128xf32>
    %305 = arith.divf %303, %304 : vector<8x128xf32>
    %306 = math.tanh %300 : vector<8x128xf32>
    %307 = vector.extract_strided_slice %305 {offsets = [0, 0], sizes = [8, 32], strides = [1, 1]} : vector<8x128xf32> to vector<8x32xf32>
    %308 = vector.extract_strided_slice %305 {offsets = [0, 32], sizes = [8, 32], strides = [1, 1]} : vector<8x128xf32> to vector<8x32xf32>
    %309 = vector.extract_strided_slice %306 {offsets = [0, 64], sizes = [8, 32], strides = [1, 1]} : vector<8x128xf32> to vector<8x32xf32>
    %310 = vector.extract_strided_slice %305 {offsets = [0, 96], sizes = [8, 32], strides = [1, 1]} : vector<8x128xf32> to vector<8x32xf32>
    %311 = arith.mulf %308, %291 : vector<8x32xf32>
    %312 = arith.mulf %307, %309 : vector<8x32xf32>
    %313 = arith.addf %311, %312 : vector<8x32xf32>
    %314 = math.tanh %313 : vector<8x32xf32>
    %315 = arith.mulf %310, %314 : vector<8x32xf32>
    %cst_69 = arith.constant dense<0.000000e+00> : vector<8x8xf32>
    %316 = tpu.matmul %315, %2, %cst_69 {dimension_numbers = #tpu.dot_dimension_numbers<[1], [0], [0], [1], [0, 0, 1, 1], [], []>} : vector<8x32xf32>, vector<32x8xf32>, vector<8x8xf32> -> vector<8x8xf32>
    %317 = arith.addf %316, %8 : vector<8x8xf32>
    %c0_70 = arith.constant 0 : index
    %c0_71 = arith.constant 0 : index
    %c0_72 = arith.constant 0 : index
    %318 = vector.load %arg9[%c0_70, %c0_71, %c0_72] : memref<8x8x8xf32, #tpu.memory_space<vmem>>, vector<1x8x8xf32>
    %319 = vector.shape_cast %318 : vector<1x8x8xf32> to vector<8x8xf32>
    %320 = vector.shape_cast %317 : vector<8x8xf32> to vector<1x8x8xf32>
    tpu.vector_store %arg9[%c0_70, %c0_71, %c0_72], %320 {strides = array<i32>} : memref<8x8x8xf32, #tpu.memory_space<vmem>>, vector<1x8x8xf32>,
    return
  }
  func.func @transform_0(%arg0: i32) -> (i32, i32, i32) {
    %c0_i32 = arith.constant 0 : i32
    %c0_i32_0 = arith.constant 0 : i32
    %c0_i32_1 = arith.constant 0 : i32
    return %c0_i32, %arg0, %c0_i32_0 : i32, i32, i32
  }
  func.func @transform_1(%arg0: i32) -> (i32, i32) {
    %c0_i32 = arith.constant 0 : i32
    %c0_i32_0 = arith.constant 0 : i32
    %c0_i32_1 = arith.constant 0 : i32
    return %c0_i32, %c0_i32_0 : i32, i32
  }
  func.func @transform_2(%arg0: i32) -> (i32, i32) {
    %c0_i32 = arith.constant 0 : i32
    %c0_i32_0 = arith.constant 0 : i32
    %c0_i32_1 = arith.constant 0 : i32
    return %c0_i32, %c0_i32_0 : i32, i32
  }
  func.func @transform_3(%arg0: i32) -> (i32, i32) {
    %c0_i32 = arith.constant 0 : i32
    %c0_i32_0 = arith.constant 0 : i32
    %c0_i32_1 = arith.constant 0 : i32
    return %c0_i32, %c0_i32_0 : i32, i32
  }
  func.func @transform_4(%arg0: i32) -> (i32, i32) {
    %c0_i32 = arith.constant 0 : i32
    %c0_i32_0 = arith.constant 0 : i32
    %c0_i32_1 = arith.constant 0 : i32
    return %c0_i32, %c0_i32_0 : i32, i32
  }
  func.func @transform_5(%arg0: i32) -> (i32, i32) {
    %c0_i32 = arith.constant 0 : i32
    %c0_i32_0 = arith.constant 0 : i32
    %c0_i32_1 = arith.constant 0 : i32
    return %c0_i32, %c0_i32_0 : i32, i32
  }
  func.func @transform_6(%arg0: i32) -> (i32, i32) {
    %c0_i32 = arith.constant 0 : i32
    %c0_i32_0 = arith.constant 0 : i32
    %c0_i32_1 = arith.constant 0 : i32
    return %c0_i32, %c0_i32_0 : i32, i32
  }
  func.func @transform_7(%arg0: i32) -> (i32, i32) {
    %c0_i32 = arith.constant 0 : i32
    %c0_i32_0 = arith.constant 0 : i32
    %c0_i32_1 = arith.constant 0 : i32
    return %c0_i32, %c0_i32_0 : i32, i32
  }
  func.func @transform_8(%arg0: i32) -> (i32, i32, i32) {
    %c0_i32 = arith.constant 0 : i32
    %c0_i32_0 = arith.constant 0 : i32
    %c0_i32_1 = arith.constant 0 : i32
    return %c0_i32, %arg0, %c0_i32_0 : i32, i32, i32
  }
}

</mosaic_0001>

<bundles_post_ra>
// kernel: lstm_ed_forward.1
= control target key start
LH: loop header
LB: loop body
LE: loop exit
PB: predicated region body
PF: predicated region fallthrough
CT: control target
= control target key end

     0   :  { %vm71_vm0 = vcmask 64512   ;;  %v2986_v0 = vmov 0.0|0.0   ;;  %vm2987_vm1 = vmmov 0   ;;  %v2988_v4 = vmov 0.0   ;;  %s2989_s19 = smov 64   ;;  %s3426_s2 = inlined_call_operand.vmem [shape: f32[32,128], index: 2, kind: input, shape index: {}]   ;;  %s3427_s1 = inlined_call_operand.vmem [shape: f32[8,128], index: 1, kind: input, shape index: {}]   ;;  %s3428_s0 = inlined_call_operand.vmem [shape: f32[8,8,8], index: 0, kind: input, shape index: {}]   ;;  %s3429_s3 = inlined_call_operand.vmem [shape: f32[1,128], index: 3, kind: input, shape index: {}]   ;;  %s3430_s6 = inlined_call_operand.vmem [shape: f32[32,8], index: 6, kind: input, shape index: {}]   ;;  %s3431_s4 = inlined_call_operand.vmem [shape: f32[32,128], index: 4, kind: input, shape index: {}]   ;;  %s3432_s7 = inlined_call_operand.vmem [shape: f32[1,8], index: 7, kind: input, shape index: {}]   ;;  %s3433_s5 = inlined_call_operand.vmem [shape: f32[1,128], index: 5, kind: input, shape index: {}]   ;;  %s3434_s8 = inlined_call_operand.vmem [shape: f32[8,8,8], index: 8, kind: output, shape index: {}]  }
   0x1   :  { %2723 = vmatprep.subr.bf16.mxu1 %v2986_v0  ;;  %v29_v1 = vld [vmem:[%s3426_s2] sm:$0xff]  ;;  %v30_v2 = vld [vmem:[%s3426_s2 + $0x8] sm:$0xff]  ;;  %2478 = vmatprep.mubr.msk.f32.mxu1 %vm2987_vm1, %v2988_v4  ;;  %v31_v8 = vld [vmem:[%s3426_s2 + $0x10] sm:$0xff]  ;;  %vm201_vm2 = vcmask 261120  }
   0x2   :  { %v63_v3 = vld [vmem:[%s3427_s1] sm:$0xff]  ;;  %v3048_v5 = vpack.c.bf16 %v30_v2, %v29_v1  ;;  %v56_v7 = vld [vmem:[%s3428_s0 + $0x8] sm:$0xff]  ;;  %v32_v9 = vld [vmem:[%s3426_s2 + $0x18] sm:$0xff] }
   0x3   :  { %2456 = vmatprep.subr.mxu0 %v63_v3  ;;  %v55_v6 = vld [vmem:[%s3428_s0] sm:$0xff]  ;;  %v3065_v10 = vpack.c.bf16 %v32_v9, %v31_v8  ;;  %v57_v46 = vld [vmem:[%s3428_s0 + $0x10] sm:$0xff]  ;;  %v58_v47 = vld [vmem:[%s3428_s0 + $0x18] sm:$0xff] }
   0x4   :  { %2457 = vmatpush3.msra.mxu0 %v63_v3  ;;  %2458 = vmatprep.mubr.msk.f32.mxu0 %vm71_vm0, %v55_v6  ;;  %v3085_v12 = vld [vmem:[%s3429_s3] ss:$0 sm:$0xff]  ;;  %s2990_s3 = smov 32   ;;  %v60_v49 = vld [vmem:[%s3428_s0 + $0x28] sm:$0xff]  ;;  %v61_v50 = vld [vmem:[%s3428_s0 + $0x30] sm:$0xff] }
   0x5   :  { %2725 = vmatpush3.bf16.msra.mxu1 %v3048_v5  ;;  %2459 = vmatmul.mubr.msk.f32.vlgmr.msra.gmra.mrb[0].mxu0 %vm71_vm0, %v56_v7  ;;  %v59_v48 = vld [vmem:[%s3428_s0 + $0x20] sm:$0xff]  ;;  %v62_v51 = vld [vmem:[%s3428_s0 + $0x38] sm:$0xff] }
   0x6   :  { %2726 = vmatprep.subr.bf16.mxu1 %v2986_v0  ;;  %2735 = vmatprep.subr.bf16.mxu0 %v2986_v0 }
   0x7   :  { %2737 = vmatpush3.bf16.msra.mxu0 %v3048_v5  ;;  %2461 = vmatprep.mubr.msk.f32.mxu0 %vm71_vm0, %v57_v46 }
   0x8   :  { %2738 = vmatprep.subr.bf16.mxu0 %v2986_v0 }
   0x9   :  { %2728 = vmatpush3.bf16.msra.mxu1 %v3065_v10  ;;  %2462 = vmatmul.mubr.msk.f32.gmra.mrb[2].mxu0 %vm71_vm0, %v58_v47 }
   0xa   :  { %2729 = vmatprep.subr.bf16.mxu1 %v2986_v0  ;;  %2464 = vmatprep.mubr.msk.f32.mxu0 %vm71_vm0, %v59_v48 }
   0xb   :  { %2740 = vmatpush3.bf16.msra.mxu0 %v3065_v10 }
   0xc   :  { %2479 = vmatmul.mubr.f32.vlgmr.msra.gmra.mrb[0].mxu1 %v2988_v4  ;;  %2747 = vmatprep.subr.bf16.mxu0 %v2986_v0 }
   0xd   :  { %2731 = vmatpush3.bf16.msra.mxu1 %v3048_v5  ;;  %2489 = vmatprep.mubr.msk.f32.mxu1 %vm2987_vm1, %v2988_v4 }
   0xe   :  { %2732 = vmatprep.subr.bf16.mxu1 %v2986_v0  ;;  %2465 = vmatmul.mubr.msk.f32.gmra.mrb[4].mxu0 %vm71_vm0, %v60_v49 }
   0xf   :  { %2467 = vmatprep.mubr.msk.f32.mxu0 %vm71_vm0, %v61_v50 }
  0x11   :  { %2734 = vmatpush3.bf16.msra.mxu1 %v3065_v10 }
  0x12   :  { %2741 = vmatprep.subr.bf16.mxu1 %v2986_v0  ;;  %2468 = vmatmul.mubr.msk.f32.gmra.mrb[6].mxu0 %vm71_vm0, %v62_v51 }
  0x13   :  { %2500 = vmatprep.mubr.msk.f32.mxu0 %vm2987_vm1, %v2988_v4 }
  0xd8   :  { %v2460_v11 = vpop.f32.mrb[0].mxu0 }
  0xd9   :  { %v162_v13 = vpop.f32.mrb[1].mxu0  ;;  %v168_v32 = vadd.f32 %v2460_v11, %v3085_v12 }
  0xda   :  { %v163_v14 = vadd.f32 %v3085_v12, %v162_v13 }
  0xdc   :  { %v2463_v55 = vpop.f32.mrb[2].mxu0 }
  0xdd   :  { %v172_v56 = vpop.f32.mrb[3].mxu0 }
  0xde   :  { %v173_v62 = vadd.f32 %v3085_v12, %v172_v56 }
  0xdf   :  { %v271_v15 = vpop.f32.mrb[0].mxu1 }
  0xe0   :  { %v275_v16 = vadd.f32 %v271_v15, %v163_v14  ;;  %v2480_v17 = vpop.f32.mrb[1].mxu1 }
  0xe1   :  { %v3130_v57 = vpop.f32.mrb[4].mxu0 }
  0xe2   :  { %2866 = vtanh.f32 %v275_v16  ;;  %v2288_v19 = vmul.f32 -1.442695, %v275_v16  ;;  %v3132_v58 = vpop.f32.mrb[5].mxu0 }
  0xe4   :  { %2868 = vpow2.f32 %v2288_v19 }
  0xe5   :  { %v3134_v59 = vpop.f32.mrb[6].mxu0 }
  0xe6   :  { %v3136_v60 = vpop.f32.mrb[7].mxu0 }
  0xec   :  { %v2867_v18 = vpop.eup %2866 }
  0xed   :  { %285 = vrot.lane.b32.xlu0 %v2867_v18, %s2989_s19 }
  0xee   :  { %v2869_v20 = vpop.eup %2868 }
  0xef   :  { %v279_v21 = vadd.f32 1.0, %v2869_v20 }
  0xf1   :  { %2870 = vrcp.f32 %v279_v21  ;;  %v178_v21 = vadd.f32 %v2463_v55, %v3085_v12 }
  0xfb   :  { %v2871_v22 = vpop.eup %2870 }
  0xfc   :  { %v283_v25 = vmul.f32 0.0, %v2871_v22 }
 0x15f   :  { %v286_v23 = vpop.permute.xlu0 %285 }
 0x160   :  { %v288_v24 = vmul.f32 %v2871_v22, %v286_v23 }
 0x162   :  { %290 = vrot.lane.b32.xlu0 %v288_v24, %s2990_s3 }
 0x1d4   :  { %v291_v26 = vpop.permute.xlu0 %290 }
 0x1d5   :  { %v293_v27 = vadd.f32 %v291_v26, %v283_v25 }
 0x1d7   :  { %2872 = vtanh.f32 %v293_v27 }
 0x1e1   :  { %v2873_v28 = vpop.eup %2872 }
 0x1e2   :  { %296 = vrot.lane.b32.xlu1 %v2873_v28, %s2989_s19 }
 0x254   :  { %v297_v29 = vpop.permute.xlu1 %296 }
 0x255   :  { %v299_v30 = vmul.f32 %v2871_v22, %v297_v29 }
 0x257   :  { %301 = vrot.lane.b32.xlu1 %v299_v30, %s2990_s3 }
 0x2c9   :  { %v302_v31 = vpop.permute.xlu1 %301 }
 0x2ca   :  { %2490 = vmatmul.mubr.msk.f32.vlgmr.msra.gmra.mrb[2].mxu1 %vm201_vm2, %v302_v31 }
 0x2cb   :  { %2743 = vmatpush3.bf16.msra.mxu1 %v3048_v5  ;;  %2511 = vmatprep.mubr.msk.f32.mxu1 %vm2987_vm1, %v2988_v4 }
 0x2cc   :  { %2744 = vmatprep.subr.bf16.mxu1 %v2986_v0 }
 0x2cf   :  { %2746 = vmatpush3.bf16.msra.mxu1 %v3065_v10 }
 0x2d0   :  { %2753 = vmatprep.subr.bf16.mxu1 %v2986_v0 }
 0x39d   :  { %v371_v33 = vpop.f32.mrb[2].mxu1 }
 0x39e   :  { %v375_v34 = vadd.f32 %v371_v33, %v168_v32  ;;  %v2491_v35 = vpop.f32.mrb[3].mxu1 }
 0x3a0   :  { %2874 = vtanh.f32 %v375_v34  ;;  %v2290_v37 = vmul.f32 -1.442695, %v375_v34 }
 0x3a2   :  { %2876 = vpow2.f32 %v2290_v37 }
 0x3aa   :  { %v2875_v36 = vpop.eup %2874 }
 0x3ab   :  { %385 = vrot.lane.b32.xlu0 %v2875_v36, %s2989_s19 }
 0x3ac   :  { %v2877_v38 = vpop.eup %2876 }
 0x3ad   :  { %v379_v39 = vadd.f32 1.0, %v2877_v38 }
 0x3af   :  { %2878 = vrcp.f32 %v379_v39  ;;  %v183_v39 = vadd.f32 %v3085_v12, %v3132_v58  ;;  %v188_v58 = vadd.f32 %v3130_v57, %v3085_v12 }
 0x3b9   :  { %v2879_v40 = vpop.eup %2878 }
 0x3ba   :  { %v383_v43 = vmul.f32 %v2879_v40, %v293_v27 }
 0x41d   :  { %v386_v41 = vpop.permute.xlu0 %385 }
 0x41e   :  { %v388_v42 = vmul.f32 %v2879_v40, %v386_v41 }
 0x420   :  { %390 = vrot.lane.b32.xlu1 %v388_v42, %s2990_s3 }
 0x492   :  { %v391_v44 = vpop.permute.xlu1 %390 }
 0x493   :  { %v393_v45 = vadd.f32 %v391_v44, %v383_v43 }
 0x495   :  { %2880 = vtanh.f32 %v393_v45 }
 0x49f   :  { %v2881_v52 = vpop.eup %2880 }
 0x4a0   :  { %396 = vrot.lane.b32.xlu0 %v2881_v52, %s2989_s19 }
 0x512   :  { %v397_v53 = vpop.permute.xlu0 %396 }
 0x513   :  { %v399_v54 = vmul.f32 %v2879_v40, %v397_v53 }
 0x515   :  { %401 = vrot.lane.b32.xlu1 %v399_v54, %s2990_s3 }
 0x587   :  { %v402_v61 = vpop.permute.xlu1 %401 }
 0x588   :  { %2501 = vmatmul.mubr.msk.f32.vlgmr.msra.gmra.mrb[8].mxu0 %vm201_vm2, %v402_v61 }
 0x589   :  { %2749 = vmatpush3.bf16.msra.mxu0 %v3048_v5  ;;  %2522 = vmatprep.mubr.msk.f32.mxu0 %vm2987_vm1, %v2988_v4 }
 0x58a   :  { %2750 = vmatprep.subr.bf16.mxu0 %v2986_v0 }
 0x58d   :  { %2752 = vmatpush3.bf16.msra.mxu0 %v3065_v10 }
 0x58e   :  { %2759 = vmatprep.subr.bf16.mxu0 %v2986_v0 }
 0x65b   :  { %v471_v63 = vpop.f32.mrb[8].mxu0 }
 0x65c   :  { %v475_v1 = vadd.f32 %v471_v63, %v173_v62  ;;  %v2502_v2 = vpop.f32.mrb[9].mxu0 }
 0x65e   :  { %2882 = vtanh.f32 %v475_v1  ;;  %v2292_v6 = vmul.f32 -1.442695, %v475_v1 }
 0x660   :  { %2884 = vpow2.f32 %v2292_v6 }
 0x668   :  { %v2883_v3 = vpop.eup %2882 }
 0x669   :  { %485 = vrot.lane.b32.xlu0 %v2883_v3, %s2989_s19 }
 0x66a   :  { %v2885_v7 = vpop.eup %2884 }
 0x66b   :  { %v479_v8 = vadd.f32 1.0, %v2885_v7 }
 0x66d   :  { %2886 = vrcp.f32 %v479_v8 }
 0x677   :  { %v2887_v9 = vpop.eup %2886 }
 0x678   :  { %v483_v14 = vmul.f32 %v2887_v9, %v393_v45 }
 0x6db   :  { %v486_v11 = vpop.permute.xlu0 %485 }
 0x6dc   :  { %v488_v13 = vmul.f32 %v2887_v9, %v486_v11 }
 0x6de   :  { %490 = vrot.lane.b32.xlu1 %v488_v13, %s2990_s3 }
 0x750   :  { %v491_v15 = vpop.permute.xlu1 %490 }
 0x751   :  { %v493_v16 = vadd.f32 %v491_v15, %v483_v14 }
 0x753   :  { %2888 = vtanh.f32 %v493_v16 }
 0x75d   :  { %v2889_v17 = vpop.eup %2888 }
 0x75e   :  { %496 = vrot.lane.b32.xlu0 %v2889_v17, %s2989_s19 }
 0x7d0   :  { %v497_v18 = vpop.permute.xlu0 %496 }
 0x7d1   :  { %v499_v19 = vmul.f32 %v2887_v9, %v497_v18 }
 0x7d3   :  { %501 = vrot.lane.b32.xlu1 %v499_v19, %s2990_s3 }
 0x845   :  { %v502_v20 = vpop.permute.xlu1 %501 }
 0x846   :  { %2512 = vmatmul.mubr.msk.f32.vlgmr.msra.gmra.mrb[4].mxu1 %vm201_vm2, %v502_v20 }
 0x847   :  { %2755 = vmatpush3.bf16.msra.mxu1 %v3048_v5  ;;  %2533 = vmatprep.mubr.msk.f32.mxu1 %vm2987_vm1, %v2988_v4 }
 0x848   :  { %2756 = vmatprep.subr.bf16.mxu1 %v2986_v0 }
 0x84b   :  { %2758 = vmatpush3.bf16.msra.mxu1 %v3065_v10 }
 0x84c   :  { %2765 = vmatprep.subr.bf16.mxu1 %v2986_v0 }
 0x919   :  { %v571_v22 = vpop.f32.mrb[4].mxu1 }
 0x91a   :  { %v575_v23 = vadd.f32 %v571_v22, %v178_v21  ;;  %v2513_v24 = vpop.f32.mrb[5].mxu1 }
 0x91c   :  { %2890 = vtanh.f32 %v575_v23  ;;  %v2294_v26 = vmul.f32 -1.442695, %v575_v23 }
 0x91e   :  { %2892 = vpow2.f32 %v2294_v26 }
 0x926   :  { %v2891_v25 = vpop.eup %2890 }
 0x927   :  { %585 = vrot.lane.b32.xlu0 %v2891_v25, %s2989_s19 }
 0x928   :  { %v2893_v27 = vpop.eup %2892 }
 0x929   :  { %v579_v28 = vadd.f32 1.0, %v2893_v27 }
 0x92b   :  { %2894 = vrcp.f32 %v579_v28 }
 0x935   :  { %v2895_v29 = vpop.eup %2894 }
 0x936   :  { %v583_v32 = vmul.f32 %v2895_v29, %v493_v16  ;;  %v193_v16 = vadd.f32 %v3085_v12, %v3136_v60 }
 0x999   :  { %v586_v30 = vpop.permute.xlu0 %585 }
 0x99a   :  { %v588_v31 = vmul.f32 %v2895_v29, %v586_v30 }
 0x99c   :  { %590 = vrot.lane.b32.xlu1 %v588_v31, %s2990_s3 }
 0xa0e   :  { %v591_v33 = vpop.permute.xlu1 %590 }
 0xa0f   :  { %v593_v34 = vadd.f32 %v591_v33, %v583_v32  ;;  %v198_v33 = vadd.f32 %v3134_v59, %v3085_v12  ;;  %v37_v59 = vld [vmem:[%s3430_s6] sm:$0xff] }
 0xa11   :  { %2896 = vtanh.f32 %v593_v34 }
 0xa1b   :  { %v2897_v35 = vpop.eup %2896 }
 0xa1c   :  { %596 = vrot.lane.b32.xlu0 %v2897_v35, %s2989_s19 }
 0xa8e   :  { %v597_v36 = vpop.permute.xlu0 %596 }
 0xa8f   :  { %v599_v37 = vmul.f32 %v2895_v29, %v597_v36 }
 0xa91   :  { %601 = vrot.lane.b32.xlu1 %v599_v37, %s2990_s3 }
 0xb03   :  { %v602_v38 = vpop.permute.xlu1 %601 }
 0xb04   :  { %2523 = vmatmul.mubr.msk.f32.vlgmr.msra.gmra.mrb[10].mxu0 %vm201_vm2, %v602_v38 }
 0xb05   :  { %2761 = vmatpush3.bf16.msra.mxu0 %v3048_v5  ;;  %2544 = vmatprep.mubr.msk.f32.mxu0 %vm2987_vm1, %v2988_v4 }
 0xb06   :  { %2762 = vmatprep.subr.bf16.mxu0 %v2986_v0 }
 0xb09   :  { %2764 = vmatpush3.bf16.msra.mxu0 %v3065_v10 }
 0xb0a   :  { %2771 = vmatprep.subr.bf16.mxu0 %v2986_v0 }
 0xbd7   :  { %v671_v40 = vpop.f32.mrb[10].mxu0 }
 0xbd8   :  { %v675_v41 = vadd.f32 %v671_v40, %v183_v39  ;;  %v2524_v42 = vpop.f32.mrb[11].mxu0 }
 0xbda   :  { %2898 = vtanh.f32 %v675_v41  ;;  %v2296_v44 = vmul.f32 -1.442695, %v675_v41 }
 0xbdc   :  { %2900 = vpow2.f32 %v2296_v44 }
 0xbe4   :  { %v2899_v43 = vpop.eup %2898 }
 0xbe5   :  { %685 = vrot.lane.b32.xlu0 %v2899_v43, %s2989_s19 }
 0xbe6   :  { %v2901_v45 = vpop.eup %2900 }
 0xbe7   :  { %v679_v46 = vadd.f32 1.0, %v2901_v45 }
 0xbe9   :  { %2902 = vrcp.f32 %v679_v46  ;;  %v38_v46 = vld [vmem:[%s3430_s6 + $0x8] sm:$0xff] }
 0xbf3   :  { %v2903_v47 = vpop.eup %2902 }
 0xbf4   :  { %v683_v50 = vmul.f32 %v2903_v47, %v593_v34 }
 0xc57   :  { %v686_v48 = vpop.permute.xlu0 %685 }
 0xc58   :  { %v688_v49 = vmul.f32 %v2903_v47, %v686_v48  ;;  %v3216_v48 = vpack.c.bf16 %v38_v46, %v37_v59 }
 0xc5a   :  { %690 = vrot.lane.b32.xlu1 %v688_v49, %s2990_s3  ;;  %v34_v49 = vld [vmem:[%s3431_s4 + $0x8] sm:$0xff] }
 0xccc   :  { %v691_v51 = vpop.permute.xlu1 %690 }
 0xccd   :  { %v693_v52 = vadd.f32 %v691_v51, %v683_v50  ;;  %v39_v50 = vld [vmem:[%s3430_s6 + $0x10] sm:$0xff]  ;;  %v40_v51 = vld [vmem:[%s3430_s6 + $0x18] sm:$0xff] }
 0xccf   :  { %2904 = vtanh.f32 %v693_v52 }
 0xcd9   :  { %v2905_v53 = vpop.eup %2904 }
 0xcda   :  { %696 = vrot.lane.b32.xlu0 %v2905_v53, %s2989_s19  ;;  %v35_v53 = vld [vmem:[%s3431_s4 + $0x10] sm:$0xff] }
 0xd4c   :  { %v697_v54 = vpop.permute.xlu0 %696 }
 0xd4d   :  { %v699_v55 = vmul.f32 %v2903_v47, %v697_v54  ;;  %v33_v47 = vld [vmem:[%s3431_s4] sm:$0xff]  ;;  %v36_v54 = vld [vmem:[%s3431_s4 + $0x18] sm:$0xff] }
 0xd4f   :  { %701 = vrot.lane.b32.xlu1 %v699_v55, %s2990_s3  ;;  %v3236_v55 = vpack.c.bf16 %v40_v51, %v39_v50 }
 0xdc1   :  { %v702_v56 = vpop.permute.xlu1 %701 }
 0xdc2   :  { %2534 = vmatmul.mubr.msk.f32.vlgmr.msra.gmra.mrb[6].mxu1 %vm201_vm2, %v702_v56  ;;  %v3240_v56 = vpack.c.bf16 %v36_v54, %v35_v53 }
 0xdc3   :  { %2767 = vmatpush3.bf16.msra.mxu1 %v3048_v5  ;;  %2555 = vmatprep.mubr.msk.f32.mxu1 %vm2987_vm1, %v2988_v4 }
 0xdc4   :  { %2768 = vmatprep.subr.bf16.mxu1 %v2986_v0 }
 0xdc7   :  { %2770 = vmatpush3.bf16.msra.mxu1 %v3065_v10 }
 0xdc8   :  { %2777 = vmatprep.subr.bf16.mxu1 %v2986_v0 }
 0xe95   :  { %v771_v61 = vpop.f32.mrb[6].mxu1 }
 0xe96   :  { %v775_v62 = vadd.f32 %v771_v61, %v188_v58  ;;  %v2535_v63 = vpop.f32.mrb[7].mxu1 }
 0xe98   :  { %2906 = vtanh.f32 %v775_v62  ;;  %v2298_v5 = vmul.f32 -1.442695, %v775_v62 }
 0xe9a   :  { %2908 = vpow2.f32 %v2298_v5  ;;  %v3271_v5 = vld [vmem:[%s3433_s5] ss:$0 sm:$0xff] }
 0xea2   :  { %v2907_v1 = vpop.eup %2906 }
 0xea3   :  { %785 = vrot.lane.b32.xlu0 %v2907_v1, %s2989_s19  ;;  %v3266_v1 = vld [vmem:[%s3432_s7] ss:$0 sm:$0xff] }
 0xea4   :  { %v2909_v2 = vpop.eup %2908 }
 0xea5   :  { %v779_v3 = vadd.f32 1.0, %v2909_v2 }
 0xea7   :  { %2910 = vrcp.f32 %v779_v3 }
 0xeb1   :  { %v2911_v6 = vpop.eup %2910 }
 0xeb2   :  { %v783_v8 = vmul.f32 %v2911_v6, %v693_v52  ;;  %v3227_v52 = vpack.c.bf16 %v34_v49, %v33_v47 }
 0xf15   :  { %v786_v7 = vpop.permute.xlu0 %785 }
 0xf16   :  { %v788_v10 = vmul.f32 %v2911_v6, %v786_v7 }
 0xf18   :  { %790 = vrot.lane.b32.xlu1 %v788_v10, %s2990_s3 }
 0xf8a   :  { %v791_v9 = vpop.permute.xlu1 %790 }
 0xf8b   :  { %v793_v57 = vadd.f32 %v791_v9, %v783_v8 }
 0xf8d   :  { %2912 = vtanh.f32 %v793_v57 }
 0xf97   :  { %v2913_v11 = vpop.eup %2912 }
 0xf98   :  { %796 = vrot.lane.b32.xlu0 %v2913_v11, %s2989_s19 }
0x100a   :  { %v797_v13 = vpop.permute.xlu0 %796 }
0x100b   :  { %v799_v14 = vmul.f32 %v2911_v6, %v797_v13 }
0x100d   :  { %801 = vrot.lane.b32.xlu1 %v799_v14, %s2990_s3 }
0x107f   :  { %v802_v15 = vpop.permute.xlu1 %801 }
0x1080   :  { %2545 = vmatmul.mubr.msk.f32.vlgmr.msra.gmra.mrb[12].mxu0 %vm201_vm2, %v802_v15 }
0x1081   :  { %2566 = vmatprep.mubr.msk.f32.mxu0 %vm2987_vm1, %v2988_v4  ;;  %2773 = vmatpush3.bf16.msra.mxu0 %v3216_v48 }
0x1082   :  { %2774 = vmatprep.subr.bf16.mxu0 %v2986_v0 }
0x1085   :  { %2776 = vmatpush3.bf16.msra.mxu0 %v3236_v55 }
0x1086   :  { %2783 = vmatprep.subr.bf16.mxu0 %v2986_v0 }
0x1153   :  { %v871_v17 = vpop.f32.mrb[12].mxu0 }
0x1154   :  { %v875_v18 = vadd.f32 %v871_v17, %v193_v16  ;;  %v2546_v19 = vpop.f32.mrb[13].mxu0 }
0x1156   :  { %2914 = vtanh.f32 %v875_v18  ;;  %v2300_v21 = vmul.f32 -1.442695, %v875_v18 }
0x1158   :  { %2916 = vpow2.f32 %v2300_v21 }
0x1160   :  { %v2915_v20 = vpop.eup %2914 }
0x1161   :  { %885 = vrot.lane.b32.xlu0 %v2915_v20, %s2989_s19 }
0x1162   :  { %v2917_v22 = vpop.eup %2916 }
0x1163   :  { %v879_v23 = vadd.f32 1.0, %v2917_v22 }
0x1165   :  { %2918 = vrcp.f32 %v879_v23 }
0x116f   :  { %v2919_v24 = vpop.eup %2918 }
0x1170   :  { %v883_v27 = vmul.f32 %v2919_v24, %v793_v57 }
0x11d3   :  { %v886_v25 = vpop.permute.xlu0 %885 }
0x11d4   :  { %v888_v26 = vmul.f32 %v2919_v24, %v886_v25 }
0x11d6   :  { %890 = vrot.lane.b32.xlu1 %v888_v26, %s2990_s3 }
0x1248   :  { %v891_v28 = vpop.permute.xlu1 %890 }
0x1249   :  { %v893_v60 = vadd.f32 %v891_v28, %v883_v27 }
0x124b   :  { %2920 = vtanh.f32 %v893_v60 }
0x1255   :  { %v2921_v29 = vpop.eup %2920 }
0x1256   :  { %896 = vrot.lane.b32.xlu0 %v2921_v29, %s2989_s19 }
0x12c8   :  { %v897_v30 = vpop.permute.xlu0 %896 }
0x12c9   :  { %v899_v31 = vmul.f32 %v2919_v24, %v897_v30 }
0x12cb   :  { %901 = vrot.lane.b32.xlu1 %v899_v31, %s2990_s3 }
0x133d   :  { %v902_v32 = vpop.permute.xlu1 %901 }
0x133e   :  { %2556 = vmatmul.mubr.msk.f32.vlgmr.msra.gmra.mrb[8].mxu1 %vm201_vm2, %v902_v32 }
0x133f   :  { %2577 = vmatprep.mubr.msk.f32.mxu1 %vm2987_vm1, %v2988_v4  ;;  %2779 = vmatpush3.bf16.msra.mxu1 %v3227_v52 }
0x1340   :  { %2780 = vmatprep.subr.bf16.mxu1 %v2986_v0 }
0x1343   :  { %2782 = vmatpush3.bf16.msra.mxu1 %v3240_v56 }
0x1344   :  { %2789 = vmatprep.subr.bf16.mxu1 %v2986_v0 }
0x1411   :  { %v971_v34 = vpop.f32.mrb[8].mxu1 }
0x1412   :  { %v975_v35 = vadd.f32 %v971_v34, %v198_v33  ;;  %v2557_v36 = vpop.f32.mrb[9].mxu1 }
0x1414   :  { %2922 = vtanh.f32 %v975_v35  ;;  %v2302_v38 = vmul.f32 -1.442695, %v975_v35 }
0x1416   :  { %2924 = vpow2.f32 %v2302_v38 }
0x141e   :  { %v2923_v37 = vpop.eup %2922 }
0x141f   :  { %985 = vrot.lane.b32.xlu0 %v2923_v37, %s2989_s19 }
0x1420   :  { %v2925_v39 = vpop.eup %2924 }
0x1421   :  { %v979_v40 = vadd.f32 1.0, %v2925_v39 }
0x1423   :  { %2926 = vrcp.f32 %v979_v40 }
0x142d   :  { %v2927_v41 = vpop.eup %2926 }
0x142e   :  { %v983_v44 = vmul.f32 %v2927_v41, %v893_v60 }
0x1491   :  { %v986_v42 = vpop.permute.xlu0 %985 }
0x1492   :  { %v988_v43 = vmul.f32 %v2927_v41, %v986_v42 }
0x1494   :  { %990 = vrot.lane.b32.xlu1 %v988_v43, %s2990_s3 }
0x1506   :  { %v991_v45 = vpop.permute.xlu1 %990 }
0x1507   :  { %v3204_v12 = vadd.f32 %v991_v45, %v983_v44 }
0x1509   :  { %2928 = vtanh.f32 %v3204_v12 }
0x1513   :  { %v2929_v58 = vpop.eup %2928 }
0x1514   :  { %996 = vrot.lane.b32.xlu0 %v2929_v58, %s2989_s19 }
0x1586   :  { %v997_v61 = vpop.permute.xlu0 %996 }
0x1587   :  { %v999_v62 = vmul.f32 %v2927_v41, %v997_v61 }
0x1589   :  { %1001 = vrot.lane.b32.xlu1 %v999_v62, %s2990_s3 }
0x15fb   :  { %v1002_v63 = vpop.permute.xlu1 %1001 }
0x15fc   :  { %2567 = vmatmul.mubr.msk.f32.vlgmr.msra.gmra.mrb[14].mxu0 %vm201_vm2, %v1002_v63  ;;  %2578 = vmatmul.mubr.msk.f32.vlgmr.msra.gmra.mrb[10].mxu1 %vm201_vm2, %v1002_v63 }
0x15fd   :  { %2785 = vmatpush3.bf16.msra.mxu0 %v3216_v48  ;;  %2791 = vmatpush3.bf16.msra.mxu1 %v3227_v52 }
0x15fe   :  { %2786 = vmatprep.subr.bf16.mxu0 %v2986_v0  ;;  %2792 = vmatprep.subr.bf16.mxu1 %v2986_v0 }
0x15ff   :  { %2588 = vmatprep.mubr.msk.f32.mxu0 %vm2987_vm1, %v2988_v4  ;;  %2599 = vmatprep.mubr.msk.f32.mxu1 %vm2987_vm1, %v2988_v4 }
0x1601   :  { %2788 = vmatpush3.bf16.msra.mxu0 %v3236_v55  ;;  %2794 = vmatpush3.bf16.msra.mxu1 %v3240_v56 }
0x1602   :  { %2795 = vmatprep.subr.bf16.mxu0 %v2986_v0  ;;  %2801 = vmatprep.subr.bf16.mxu1 %v2986_v0 }
0x16cf   :  { %v1071_v2 = vpop.f32.mrb[14].mxu0  ;;  %v1143_v3 = vpop.f32.mrb[10].mxu1 }
0x16d0   :  { %v1072_v6 = vadd.f32 %v3266_v1, %v1071_v2  ;;  %v1144_v7 = vadd.f32 %v3271_v5, %v1143_v3  ;;  %v2568_v10 = vpop.f32.mrb[15].mxu0  ;;  %v2579_v8 = vpop.f32.mrb[11].mxu1 }
0x16d2   :  { %2304 = vst.msk [vmem:[%s3434_s8 + $0x38] sm:$0xff] %vm71_vm0, %v1072_v6  ;;  %2930 = vtanh.f32 %v1144_v7  ;;  %v2306_v57 = vmul.f32 -1.442695, %v1144_v7 }
0x16d4   :  { %2932 = vpow2.f32 %v2306_v57 }
0x16dc   :  { %v2931_v9 = vpop.eup %2930 }
0x16dd   :  { %1156 = vrot.lane.b32.xlu0 %v2931_v9, %s2989_s19 }
0x16de   :  { %v2933_v11 = vpop.eup %2932 }
0x16df   :  { %v1150_v13 = vadd.f32 1.0, %v2933_v11 }
0x16e1   :  { %2934 = vrcp.f32 %v1150_v13 }
0x16eb   :  { %v2935_v14 = vpop.eup %2934 }
0x16ec   :  { %v1154_v17 = vmul.f32 %v2935_v14, %v3204_v12 }
0x174f   :  { %v1157_v15 = vpop.permute.xlu0 %1156 }
0x1750   :  { %v1159_v16 = vmul.f32 %v2935_v14, %v1157_v15 }
0x1752   :  { %1161 = vrot.lane.b32.xlu1 %v1159_v16, %s2990_s3 }
0x17c4   :  { %v1162_v18 = vpop.permute.xlu1 %1161 }
0x17c5   :  { %v1164_v19 = vadd.f32 %v1162_v18, %v1154_v17 }
0x17c7   :  { %2936 = vtanh.f32 %v1164_v19 }
0x17d1   :  { %v2937_v20 = vpop.eup %2936 }
0x17d2   :  { %1167 = vrot.lane.b32.xlu0 %v2937_v20, %s2989_s19 }
0x1844   :  { %v1168_v21 = vpop.permute.xlu0 %1167 }
0x1845   :  { %v1170_v22 = vmul.f32 %v2935_v14, %v1168_v21 }
0x1847   :  { %1172 = vrot.lane.b32.xlu1 %v1170_v22, %s2990_s3 }
0x18b9   :  { %v1173_v23 = vpop.permute.xlu1 %1172 }
0x18ba   :  { %2589 = vmatmul.mubr.msk.f32.vlgmr.msra.gmra.mrb[16].mxu0 %vm201_vm2, %v1173_v23  ;;  %2600 = vmatmul.mubr.msk.f32.vlgmr.msra.gmra.mrb[12].mxu1 %vm201_vm2, %v1173_v23 }
0x18bb   :  { %2797 = vmatpush3.bf16.msra.mxu0 %v3216_v48  ;;  %2803 = vmatpush3.bf16.msra.mxu1 %v3227_v52 }
0x18bc   :  { %2798 = vmatprep.subr.bf16.mxu0 %v2986_v0  ;;  %2804 = vmatprep.subr.bf16.mxu1 %v2986_v0 }
0x18bd   :  { %2610 = vmatprep.mubr.msk.f32.mxu0 %vm2987_vm1, %v2988_v4  ;;  %2621 = vmatprep.mubr.msk.f32.mxu1 %vm2987_vm1, %v2988_v4 }
0x18bf   :  { %2800 = vmatpush3.bf16.msra.mxu0 %v3236_v55  ;;  %2806 = vmatpush3.bf16.msra.mxu1 %v3240_v56 }
0x18c0   :  { %2807 = vmatprep.subr.bf16.mxu0 %v2986_v0  ;;  %2813 = vmatprep.subr.bf16.mxu1 %v2986_v0 }
0x198d   :  { %v1242_v24 = vpop.f32.mrb[16].mxu0  ;;  %v1314_v25 = vpop.f32.mrb[12].mxu1 }
0x198e   :  { %v1243_v26 = vadd.f32 %v3266_v1, %v1242_v24  ;;  %v1315_v27 = vadd.f32 %v3271_v5, %v1314_v25  ;;  %v2590_v28 = vpop.f32.mrb[17].mxu0  ;;  %v2601_v60 = vpop.f32.mrb[13].mxu1 }
0x1990   :  { %2308 = vst.msk [vmem:[%s3434_s8 + $0x30] sm:$0xff] %vm71_vm0, %v1243_v26  ;;  %2938 = vtanh.f32 %v1315_v27  ;;  %v2310_v30 = vmul.f32 -1.442695, %v1315_v27 }
0x1992   :  { %2940 = vpow2.f32 %v2310_v30 }
0x199a   :  { %v2939_v29 = vpop.eup %2938 }
0x199b   :  { %1327 = vrot.lane.b32.xlu0 %v2939_v29, %s2989_s19 }
0x199c   :  { %v2941_v31 = vpop.eup %2940 }
0x199d   :  { %v1321_v32 = vadd.f32 1.0, %v2941_v31 }
0x199f   :  { %2942 = vrcp.f32 %v1321_v32 }
0x19a9   :  { %v2943_v33 = vpop.eup %2942 }
0x19aa   :  { %v1325_v36 = vmul.f32 %v2943_v33, %v1164_v19 }
0x1a0d   :  { %v1328_v34 = vpop.permute.xlu0 %1327 }
0x1a0e   :  { %v1330_v35 = vmul.f32 %v2943_v33, %v1328_v34 }
0x1a10   :  { %1332 = vrot.lane.b32.xlu1 %v1330_v35, %s2990_s3 }
0x1a82   :  { %v1333_v37 = vpop.permute.xlu1 %1332 }
0x1a83   :  { %v1335_v38 = vadd.f32 %v1333_v37, %v1325_v36 }
0x1a85   :  { %2944 = vtanh.f32 %v1335_v38 }
0x1a8f   :  { %v2945_v39 = vpop.eup %2944 }
0x1a90   :  { %1338 = vrot.lane.b32.xlu0 %v2945_v39, %s2989_s19 }
0x1b02   :  { %v1339_v40 = vpop.permute.xlu0 %1338 }
0x1b03   :  { %v1341_v41 = vmul.f32 %v2943_v33, %v1339_v40 }
0x1b05   :  { %1343 = vrot.lane.b32.xlu1 %v1341_v41, %s2990_s3 }
0x1b77   :  { %v1344_v42 = vpop.permute.xlu1 %1343 }
0x1b78   :  { %2611 = vmatmul.mubr.msk.f32.vlgmr.msra.gmra.mrb[18].mxu0 %vm201_vm2, %v1344_v42  ;;  %2622 = vmatmul.mubr.msk.f32.vlgmr.msra.gmra.mrb[14].mxu1 %vm201_vm2, %v1344_v42 }
0x1b79   :  { %2809 = vmatpush3.bf16.msra.mxu0 %v3216_v48  ;;  %2815 = vmatpush3.bf16.msra.mxu1 %v3227_v52 }
0x1b7a   :  { %2810 = vmatprep.subr.bf16.mxu0 %v2986_v0  ;;  %2816 = vmatprep.subr.bf16.mxu1 %v2986_v0 }
0x1b7b   :  { %2632 = vmatprep.mubr.msk.f32.mxu0 %vm2987_vm1, %v2988_v4  ;;  %2643 = vmatprep.mubr.msk.f32.mxu1 %vm2987_vm1, %v2988_v4 }
0x1b7d   :  { %2812 = vmatpush3.bf16.msra.mxu0 %v3236_v55  ;;  %2818 = vmatpush3.bf16.msra.mxu1 %v3240_v56 }
0x1b7e   :  { %2819 = vmatprep.subr.bf16.mxu0 %v2986_v0  ;;  %2825 = vmatprep.subr.bf16.mxu1 %v2986_v0 }
0x1c4b   :  { %v1413_v43 = vpop.f32.mrb[18].mxu0  ;;  %v1485_v44 = vpop.f32.mrb[14].mxu1 }
0x1c4c   :  { %v1414_v45 = vadd.f32 %v3266_v1, %v1413_v43  ;;  %v1486_v12 = vadd.f32 %v3271_v5, %v1485_v44  ;;  %v2612_v59 = vpop.f32.mrb[19].mxu0  ;;  %v2623_v46 = vpop.f32.mrb[15].mxu1 }
0x1c4e   :  { %2312 = vst.msk [vmem:[%s3434_s8 + $0x28] sm:$0xff] %vm71_vm0, %v1414_v45  ;;  %2946 = vtanh.f32 %v1486_v12  ;;  %v2314_v49 = vmul.f32 -1.442695, %v1486_v12 }
0x1c50   :  { %2948 = vpow2.f32 %v2314_v49 }
0x1c58   :  { %v2947_v47 = vpop.eup %2946 }
0x1c59   :  { %1498 = vrot.lane.b32.xlu0 %v2947_v47, %s2989_s19 }
0x1c5a   :  { %v2949_v50 = vpop.eup %2948 }
0x1c5b   :  { %v1492_v51 = vadd.f32 1.0, %v2949_v50 }
0x1c5d   :  { %2950 = vrcp.f32 %v1492_v51 }
0x1c67   :  { %v2951_v53 = vpop.eup %2950 }
0x1c68   :  { %v1496_v61 = vmul.f32 %v2951_v53, %v1335_v38 }
0x1ccb   :  { %v1499_v54 = vpop.permute.xlu0 %1498 }
0x1ccc   :  { %v1501_v58 = vmul.f32 %v2951_v53, %v1499_v54 }
0x1cce   :  { %1503 = vrot.lane.b32.xlu1 %v1501_v58, %s2990_s3 }
0x1d40   :  { %v1504_v62 = vpop.permute.xlu1 %1503 }
0x1d41   :  { %v1506_v63 = vadd.f32 %v1504_v62, %v1496_v61 }
0x1d43   :  { %2952 = vtanh.f32 %v1506_v63 }
0x1d4d   :  { %v2953_v2 = vpop.eup %2952 }
0x1d4e   :  { %1509 = vrot.lane.b32.xlu0 %v2953_v2, %s2989_s19 }
0x1dc0   :  { %v1510_v3 = vpop.permute.xlu0 %1509 }
0x1dc1   :  { %v1512_v6 = vmul.f32 %v2951_v53, %v1510_v3 }
0x1dc3   :  { %1514 = vrot.lane.b32.xlu1 %v1512_v6, %s2990_s3 }
0x1e35   :  { %v1515_v7 = vpop.permute.xlu1 %1514 }
0x1e36   :  { %2633 = vmatmul.mubr.msk.f32.vlgmr.msra.gmra.mrb[20].mxu0 %vm201_vm2, %v1515_v7  ;;  %2644 = vmatmul.mubr.msk.f32.vlgmr.msra.gmra.mrb[16].mxu1 %vm201_vm2, %v1515_v7 }
0x1e37   :  { %2821 = vmatpush3.bf16.msra.mxu0 %v3216_v48  ;;  %2827 = vmatpush3.bf16.msra.mxu1 %v3227_v52 }
0x1e38   :  { %2822 = vmatprep.subr.bf16.mxu0 %v2986_v0  ;;  %2828 = vmatprep.subr.bf16.mxu1 %v2986_v0 }
0x1e39   :  { %2654 = vmatprep.mubr.msk.f32.mxu0 %vm2987_vm1, %v2988_v4  ;;  %2665 = vmatprep.mubr.msk.f32.mxu1 %vm2987_vm1, %v2988_v4 }
0x1e3b   :  { %2824 = vmatpush3.bf16.msra.mxu0 %v3236_v55  ;;  %2830 = vmatpush3.bf16.msra.mxu1 %v3240_v56 }
0x1e3c   :  { %2831 = vmatprep.subr.bf16.mxu0 %v2986_v0  ;;  %2837 = vmatprep.subr.bf16.mxu1 %v2986_v0 }
0x1f09   :  { %v1584_v10 = vpop.f32.mrb[20].mxu0  ;;  %v1656_v8 = vpop.f32.mrb[16].mxu1 }
0x1f0a   :  { %v1585_v9 = vadd.f32 %v3266_v1, %v1584_v10  ;;  %v1657_v57 = vadd.f32 %v3271_v5, %v1656_v8  ;;  %v2634_v11 = vpop.f32.mrb[21].mxu0  ;;  %v2645_v13 = vpop.f32.mrb[17].mxu1 }
0x1f0c   :  { %2316 = vst.msk [vmem:[%s3434_s8 + $0x20] sm:$0xff] %vm71_vm0, %v1585_v9  ;;  %2954 = vtanh.f32 %v1657_v57  ;;  %v2318_v15 = vmul.f32 -1.442695, %v1657_v57 }
0x1f0e   :  { %2956 = vpow2.f32 %v2318_v15 }
0x1f16   :  { %v2955_v14 = vpop.eup %2954 }
0x1f17   :  { %1669 = vrot.lane.b32.xlu0 %v2955_v14, %s2989_s19 }
0x1f18   :  { %v2957_v16 = vpop.eup %2956 }
0x1f19   :  { %v1663_v17 = vadd.f32 1.0, %v2957_v16 }
0x1f1b   :  { %2958 = vrcp.f32 %v1663_v17 }
0x1f25   :  { %v2959_v18 = vpop.eup %2958 }
0x1f26   :  { %v1667_v21 = vmul.f32 %v2959_v18, %v1506_v63 }
0x1f89   :  { %v1670_v19 = vpop.permute.xlu0 %1669 }
0x1f8a   :  { %v1672_v20 = vmul.f32 %v2959_v18, %v1670_v19 }
0x1f8c   :  { %1674 = vrot.lane.b32.xlu1 %v1672_v20, %s2990_s3 }
0x1ffe   :  { %v1675_v22 = vpop.permute.xlu1 %1674 }
0x1fff   :  { %v1677_v23 = vadd.f32 %v1675_v22, %v1667_v21 }
0x2001   :  { %2960 = vtanh.f32 %v1677_v23 }
0x200b   :  { %v2961_v24 = vpop.eup %2960 }
0x200c   :  { %1680 = vrot.lane.b32.xlu0 %v2961_v24, %s2989_s19 }
0x207e   :  { %v1681_v25 = vpop.permute.xlu0 %1680 }
0x207f   :  { %v1683_v26 = vmul.f32 %v2959_v18, %v1681_v25 }
0x2081   :  { %1685 = vrot.lane.b32.xlu1 %v1683_v26, %s2990_s3 }
0x20f3   :  { %v1686_v27 = vpop.permute.xlu1 %1685 }
0x20f4   :  { %2655 = vmatmul.mubr.msk.f32.vlgmr.msra.gmra.mrb[22].mxu0 %vm201_vm2, %v1686_v27  ;;  %2666 = vmatmul.mubr.msk.f32.vlgmr.msra.gmra.mrb[18].mxu1 %vm201_vm2, %v1686_v27 }
0x20f5   :  { %2833 = vmatpush3.bf16.msra.mxu0 %v3216_v48  ;;  %2839 = vmatpush3.bf16.msra.mxu1 %v3227_v52 }
0x20f6   :  { %2834 = vmatprep.subr.bf16.mxu0 %v2986_v0  ;;  %2840 = vmatprep.subr.bf16.mxu1 %v2986_v0 }
0x20f7   :  { %2676 = vmatprep.mubr.msk.f32.mxu0 %vm2987_vm1, %v2988_v4  ;;  %2687 = vmatprep.mubr.msk.f32.mxu1 %vm2987_vm1, %v2988_v4 }
0x20f9   :  { %2836 = vmatpush3.bf16.msra.mxu0 %v3236_v55  ;;  %2842 = vmatpush3.bf16.msra.mxu1 %v3240_v56 }
0x20fa   :  { %2843 = vmatprep.subr.bf16.mxu0 %v2986_v0  ;;  %2849 = vmatprep.subr.bf16.mxu1 %v2986_v0 }
0x21c7   :  { %v1755_v28 = vpop.f32.mrb[22].mxu0  ;;  %v1827_v60 = vpop.f32.mrb[18].mxu1 }
0x21c8   :  { %v1756_v29 = vadd.f32 %v3266_v1, %v1755_v28  ;;  %v1828_v30 = vadd.f32 %v3271_v5, %v1827_v60  ;;  %v2656_v31 = vpop.f32.mrb[23].mxu0  ;;  %v2667_v32 = vpop.f32.mrb[19].mxu1 }
0x21ca   :  { %2320 = vst.msk [vmem:[%s3434_s8 + $0x18] sm:$0xff] %vm71_vm0, %v1756_v29  ;;  %2962 = vtanh.f32 %v1828_v30  ;;  %v2322_v34 = vmul.f32 -1.442695, %v1828_v30 }
0x21cc   :  { %2964 = vpow2.f32 %v2322_v34 }
0x21d4   :  { %v2963_v33 = vpop.eup %2962 }
0x21d5   :  { %1840 = vrot.lane.b32.xlu0 %v2963_v33, %s2989_s19 }
0x21d6   :  { %v2965_v35 = vpop.eup %2964 }
0x21d7   :  { %v1834_v36 = vadd.f32 1.0, %v2965_v35 }
0x21d9   :  { %2966 = vrcp.f32 %v1834_v36 }
0x21e3   :  { %v2967_v37 = vpop.eup %2966 }
0x21e4   :  { %v1838_v40 = vmul.f32 %v2967_v37, %v1677_v23 }
0x2247   :  { %v1841_v38 = vpop.permute.xlu0 %1840 }
0x2248   :  { %v1843_v39 = vmul.f32 %v2967_v37, %v1841_v38 }
0x224a   :  { %1845 = vrot.lane.b32.xlu1 %v1843_v39, %s2990_s3 }
0x22bc   :  { %v1846_v41 = vpop.permute.xlu1 %1845 }
0x22bd   :  { %v1848_v42 = vadd.f32 %v1846_v41, %v1838_v40 }
0x22bf   :  { %2968 = vtanh.f32 %v1848_v42 }
0x22c9   :  { %v2969_v43 = vpop.eup %2968 }
0x22ca   :  { %1851 = vrot.lane.b32.xlu0 %v2969_v43, %s2989_s19 }
0x233c   :  { %v1852_v44 = vpop.permute.xlu0 %1851 }
0x233d   :  { %v1854_v45 = vmul.f32 %v2967_v37, %v1852_v44 }
0x233f   :  { %1856 = vrot.lane.b32.xlu1 %v1854_v45, %s2990_s3 }
0x23b1   :  { %v1857_v12 = vpop.permute.xlu1 %1856 }
0x23b2   :  { %2677 = vmatmul.mubr.msk.f32.vlgmr.msra.gmra.mrb[24].mxu0 %vm201_vm2, %v1857_v12  ;;  %2688 = vmatmul.mubr.msk.f32.vlgmr.msra.gmra.mrb[20].mxu1 %vm201_vm2, %v1857_v12 }
0x23b3   :  { %2845 = vmatpush3.bf16.msra.mxu0 %v3216_v48  ;;  %2851 = vmatpush3.bf16.msra.mxu1 %v3227_v52 }
0x23b4   :  { %2846 = vmatprep.subr.bf16.mxu0 %v2986_v0  ;;  %2852 = vmatprep.subr.bf16.mxu1 %v2986_v0 }
0x23b5   :  { %2698 = vmatprep.mubr.msk.f32.mxu0 %vm2987_vm1, %v2988_v4  ;;  %2709 = vmatprep.mubr.msk.f32.mxu1 %vm2987_vm1, %v2988_v4 }
0x23b7   :  { %2848 = vmatpush3.bf16.msra.mxu0 %v3236_v55  ;;  %2854 = vmatpush3.bf16.msra.mxu1 %v3240_v56 }
0x23b8   :  { %2855 = vmatprep.subr.bf16.mxu0 %v2986_v0 }
0x2485   :  { %v1926_v59 = vpop.f32.mrb[24].mxu0  ;;  %v1998_v46 = vpop.f32.mrb[20].mxu1 }
0x2486   :  { %v1927_v52 = vadd.f32 %v3266_v1, %v1926_v59  ;;  %v1999_v47 = vadd.f32 %v3271_v5, %v1998_v46  ;;  %v2678_v49 = vpop.f32.mrb[25].mxu0  ;;  %v2689_v50 = vpop.f32.mrb[21].mxu1 }
0x2488   :  { %2324 = vst.msk [vmem:[%s3434_s8 + $0x10] sm:$0xff] %vm71_vm0, %v1927_v52  ;;  %2970 = vtanh.f32 %v1999_v47  ;;  %v2326_v56 = vmul.f32 -1.442695, %v1999_v47 }
0x248a   :  { %2972 = vpow2.f32 %v2326_v56 }
0x2492   :  { %v2971_v51 = vpop.eup %2970 }
0x2493   :  { %2011 = vrot.lane.b32.xlu0 %v2971_v51, %s2989_s19 }
0x2494   :  { %v2973_v53 = vpop.eup %2972 }
0x2495   :  { %v2005_v54 = vadd.f32 1.0, %v2973_v53 }
0x2497   :  { %2974 = vrcp.f32 %v2005_v54 }
0x24a1   :  { %v2975_v58 = vpop.eup %2974 }
0x24a2   :  { %v2009_v63 = vmul.f32 %v2975_v58, %v1848_v42 }
0x2505   :  { %v2012_v61 = vpop.permute.xlu0 %2011 }
0x2506   :  { %v2014_v62 = vmul.f32 %v2975_v58, %v2012_v61 }
0x2508   :  { %2016 = vrot.lane.b32.xlu1 %v2014_v62, %s2990_s3 }
0x257a   :  { %v2017_v2 = vpop.permute.xlu1 %2016 }
0x257b   :  { %v2019_v3 = vadd.f32 %v2017_v2, %v2009_v63 }
0x257d   :  { %2976 = vtanh.f32 %v2019_v3 }
0x2587   :  { %v2977_v6 = vpop.eup %2976 }
0x2588   :  { %2022 = vrot.lane.b32.xlu0 %v2977_v6, %s2989_s19 }
0x25fa   :  { %v2023_v7 = vpop.permute.xlu0 %2022 }
0x25fb   :  { %v2025_v10 = vmul.f32 %v2975_v58, %v2023_v7 }
0x25fd   :  { %2027 = vrot.lane.b32.xlu1 %v2025_v10, %s2990_s3 }
0x266f   :  { %v2028_v8 = vpop.permute.xlu1 %2027 }
0x2670   :  { %2699 = vmatmul.mubr.msk.f32.vlgmr.msra.gmra.mrb[26].mxu0 %vm201_vm2, %v2028_v8  ;;  %2710 = vmatmul.mubr.msk.f32.vlgmr.msra.gmra.mrb[22].mxu1 %vm201_vm2, %v2028_v8 }
0x2671   :  { %2857 = vmatpush3.bf16.msra.mxu0 %v3216_v48  ;;  %2720 = vmatprep.mubr.msk.f32.mxu0 %vm2987_vm1, %v2988_v4 }
0x2672   :  { %2858 = vmatprep.subr.bf16.mxu0 %v2986_v0 }
0x2675   :  { %2860 = vmatpush3.bf16.msra.mxu0 %v3236_v55 }
0x2743   :  { %v2097_v9 = vpop.f32.mrb[26].mxu0  ;;  %v2169_v57 = vpop.f32.mrb[22].mxu1 }
0x2744   :  { %v2098_v11 = vadd.f32 %v3266_v1, %v2097_v9  ;;  %v2170_v13 = vadd.f32 %v3271_v5, %v2169_v57  ;;  %v2700_v14 = vpop.f32.mrb[27].mxu0  ;;  %v2711_v15 = vpop.f32.mrb[23].mxu1 }
0x2746   :  { %2328 = vst.msk [vmem:[%s3434_s8 + $0x8] sm:$0xff] %vm71_vm0, %v2098_v11  ;;  %2978 = vtanh.f32 %v2170_v13  ;;  %v2330_v0 = vmul.f32 -1.442695, %v2170_v13 }
0x2748   :  { %2980 = vpow2.f32 %v2330_v0 }
0x2750   :  { %v2979_v48 = vpop.eup %2978 }
0x2751   :  { %2182 = vrot.lane.b32.xlu0 %v2979_v48, %s2989_s19 }
0x2752   :  { %v2981_v4 = vpop.eup %2980 }
0x2753   :  { %v2176_v55 = vadd.f32 1.0, %v2981_v4 }
0x2755   :  { %2982 = vrcp.f32 %v2176_v55 }
0x275f   :  { %v2983_v16 = vpop.eup %2982 }
0x2760   :  { %v2180_v5 = vmul.f32 %v2983_v16, %v2019_v3 }
0x27c3   :  { %v2183_v17 = vpop.permute.xlu0 %2182 }
0x27c4   :  { %v2185_v18 = vmul.f32 %v2983_v16, %v2183_v17 }
0x27c6   :  { %2187 = vrot.lane.b32.xlu1 %v2185_v18, %s2990_s3 }
0x2838   :  { %v2188_v19 = vpop.permute.xlu1 %2187 }
0x2839   :  { %v2190_v20 = vadd.f32 %v2188_v19, %v2180_v5 }
0x283b   :  { %2984 = vtanh.f32 %v2190_v20 }
0x2845   :  { %v2985_v21 = vpop.eup %2984 }
0x2846   :  { %2193 = vrot.lane.b32.xlu0 %v2985_v21, %s2989_s19 }
0x28b8   :  { %v2194_v22 = vpop.permute.xlu0 %2193 }
0x28b9   :  { %v2196_v23 = vmul.f32 %v2983_v16, %v2194_v22 }
0x28bb   :  { %2198 = vrot.lane.b32.xlu1 %v2196_v23, %s2990_s3 }
0x292d   :  { %v2199_v24 = vpop.permute.xlu1 %2198 }
0x292e   :  { %2721 = vmatmul.mubr.msk.f32.vlgmr.msra.gmra.mrb[28].mxu0 %vm201_vm2, %v2199_v24 }
0x2a01   :  { %v2268_v25 = vpop.f32.mrb[28].mxu0 }
0x2a02   :  { %v2269_v26 = vadd.f32 %v3266_v1, %v2268_v25  ;;  %v2722_v27 = vpop.f32.mrb[29].mxu0 }
0x2a04   :  { %2272 = vst.msk [vmem:[%s3434_s8] sm:$0xff] %vm71_vm0, %v2269_v26 }

</bundles_post_ra>
